<compile_context>
chip_gen: v5e
topology: v5e:2x2
jax: 0.10.0
libtpu: 0.0.40
codegen_flags: <defaults>
</compile_context>

<pallas_src>
import functools

import jax
import jax.numpy as jnp
from jax import lax
from jax.experimental import pallas as pl
from jax.experimental.pallas import tpu as pltpu

EPS = 1e-5                 # nn.BatchNorm1d default eps
D_E = 64 * 8 * 8           # 4096
D_F = 10
D_IN = D_E + D_F           # 4106
D_HID = 100
D_HID_PAD = 128            # lane-dense hidden width
D_F_PAD = 128              # lane-dense feature_f width
D_OUT1 = 1
D_OUT2 = 4
D_HEAD_PAD = 8             # fused + padded head width

# 512-row f32 feature tiles (8 MiB) double-buffered + resident weights + h
# scratch stay well under v7x's 64 MiB VMEM; 512 already reaches ~85% of the
# measured mem-bound roofline, so no per-generation tm branch is needed.
MAX_TM = 512


def _round_up(x, m):
    return (x + m - 1) // m * m


# --------------------------------------------------------------------------- #
# Fused kernel: fc1 (bf16 in / f32 acc) + batch stats + BN + ReLU + heads.
# --------------------------------------------------------------------------- #
def _fused_kernel(fe_ref, ff_ref, w1e_ref, w1f_ref, b1_ref, gamma_ref, beta_ref,
                  wh_ref, bh_ref, out_ref, h_scr, ssum_scr, ssq_scr,
                  *, batch, tm, n_tiles):
    i = pl.program_id(0)
    last = n_tiles - 1

    @pl.when(i == 0)
    def _():
        ssum_scr[...] = jnp.zeros_like(ssum_scr)
        ssq_scr[...] = jnp.zeros_like(ssq_scr)

    # ---- fc1 on this batch tile: cast f32 -> bf16 right before the MXU ------
    h = jnp.dot(fe_ref[...].astype(jnp.bfloat16), w1e_ref[...],
                preferred_element_type=jnp.float32)
    h = h + jnp.dot(ff_ref[...].astype(jnp.bfloat16), w1f_ref[...],
                    preferred_element_type=jnp.float32)
    h = h + b1_ref[...]

    row0 = pl.multiple_of(i * tm, tm)
    h_scr[pl.ds(row0, tm), :] = h            # h never touches HBM

    # ---- batch statistics; mask only the ragged last tile -------------------
    def accumulate(hv):
        ssum_scr[...] += jnp.sum(hv, axis=0, keepdims=True)
        ssq_scr[...] += jnp.sum(hv * hv, axis=0, keepdims=True)

    if batch % tm != 0:                      # static: only when batch is ragged
        @pl.when(i != last)
        def _():
            accumulate(h)

        @pl.when(i == last)
        def _():
            row = lax.broadcasted_iota(jnp.int32, (tm, D_HID_PAD), 0) + i * tm
            accumulate(jnp.where(row < batch, h, 0.0))
    else:
        accumulate(h)

    # ---- finalize at the last tile: BN affine + ReLU + fused 8-wide heads ---
    @pl.when(i == last)
    def _():
        inv_b = 1.0 / batch
        mean = ssum_scr[...] * inv_b
        # NOTE: E[h^2]-E[h]^2 in f32; fine for these magnitudes (see review).
        var = jnp.maximum(ssq_scr[...] * inv_b - mean * mean, 0.0)
        scale = gamma_ref[...] * lax.rsqrt(var + EPS)
        shift = beta_ref[...] - mean * scale

        def tile_out(t, carry):
            r0 = pl.multiple_of(t * tm, tm)
            f = jnp.maximum(h_scr[pl.ds(r0, tm), :] * scale + shift, 0.0)
            out_ref[pl.ds(r0, tm), :] = (
                jnp.dot(f, wh_ref[...], preferred_element_type=jnp.float32)
                + bh_ref[...])
            return carry

        lax.fori_loop(0, n_tiles, tile_out, 0, unroll=n_tiles <= 8)


# --------------------------------------------------------------------------- #
# Wrapper
# --------------------------------------------------------------------------- #
def prepare_params(params):
    """One-time parameter preprocessing: split/pad/cast (plain-JAX glue)."""
    w1, b1, gamma, beta, wd1, bd1, wd2, bd2 = params

    # Split fc1 weight into the 4096-wide and 10-wide parts, pad hidden to 128
    # and the K=10 tail to 128, and cast the matmul weights to bf16.
    w1e = jnp.zeros((D_E, D_HID_PAD), jnp.float32).at[:, :D_HID].set(w1[:D_E])
    w1f = jnp.zeros((D_F_PAD, D_HID_PAD), jnp.float32).at[:D_F, :D_HID].set(w1[D_E:])
    w1e = w1e.astype(jnp.bfloat16)
    w1f = w1f.astype(jnp.bfloat16)

    b1p = jnp.zeros((1, D_HID_PAD), jnp.float32).at[:, :D_HID].set(b1.reshape(1, -1))
    gammap = jnp.zeros((1, D_HID_PAD), jnp.float32).at[:, :D_HID].set(gamma.reshape(1, -1))
    betap = jnp.zeros((1, D_HID_PAD), jnp.float32).at[:, :D_HID].set(beta.reshape(1, -1))

    # Fused heads: col 0 = fc_d1, cols 1:5 = fc_d2, cols 5:8 = zero padding.
    wh = jnp.zeros((D_HID_PAD, D_HEAD_PAD), jnp.float32)
    wh = wh.at[:D_HID, 0:1].set(wd1.reshape(D_HID, 1))
    wh = wh.at[:D_HID, 1:1 + D_OUT2].set(wd2.reshape(D_HID, D_OUT2))
    bh = jnp.zeros((1, D_HEAD_PAD), jnp.float32)
    bh = bh.at[:, 0:1].set(bd1.reshape(1, 1))
    bh = bh.at[:, 1:1 + D_OUT2].set(bd2.reshape(1, D_OUT2))

    return (w1e, w1f, b1p, gammap, betap, wh, bh)


def domain_classifier_forward(feature_e, feature_f, prepared):
    """feature_e: (B, 64, 8, 8) NCHW, feature_f: (B, 10)."""
    w1e, w1f, b1p, gamma_p, beta_p, wh, bh = prepared

    B = feature_e.shape[0]
    fe = feature_e.reshape(B, D_E)                     # f32, streamed as-is
    ff = feature_f.reshape(B, D_F)
    # Lane-pad feature_f to 128 (tiny: B*512 B) so the K-tail is lane-dense.
    ffp = jnp.zeros((B, D_F_PAD), jnp.float32).at[:, :D_F].set(ff)

    tm = _round_up(B, 8) if B <= MAX_TM else MAX_TM
    n_tiles = pl.cdiv(B, tm)
    b_pad = n_tiles * tm                               # padded rows only in VMEM/out

    kernel = functools.partial(_fused_kernel, batch=B, tm=tm, n_tiles=n_tiles)
    out = pl.pallas_call(
        kernel,
        grid=(n_tiles,),
        in_specs=[
            pl.BlockSpec((tm, D_E), lambda i: (i, 0)),                # feature_e tile (f32)
            pl.BlockSpec((tm, D_F_PAD), lambda i: (i, 0)),            # feature_f tile (f32)
            pl.BlockSpec((D_E, D_HID_PAD), lambda i: (0, 0)),         # w1[:4096] bf16, resident
            pl.BlockSpec((D_F_PAD, D_HID_PAD), lambda i: (0, 0)),     # w1[4096:] bf16, resident
            pl.BlockSpec((1, D_HID_PAD), lambda i: (0, 0)),           # b1
            pl.BlockSpec((1, D_HID_PAD), lambda i: (0, 0)),           # gamma
            pl.BlockSpec((1, D_HID_PAD), lambda i: (0, 0)),           # beta
            pl.BlockSpec((D_HID_PAD, D_HEAD_PAD), lambda i: (0, 0)),  # fused head W
            pl.BlockSpec((1, D_HEAD_PAD), lambda i: (0, 0)),          # fused head b
        ],
        out_specs=pl.BlockSpec((b_pad, D_HEAD_PAD), lambda i: (0, 0)),  # resident output
        out_shape=jax.ShapeDtypeStruct((b_pad, D_HEAD_PAD), jnp.float32),
        scratch_shapes=[
            pltpu.VMEM((b_pad, D_HID_PAD), jnp.float32),   # h (stays in VMEM)
            pltpu.VMEM((1, D_HID_PAD), jnp.float32),       # sum(h)
            pltpu.VMEM((1, D_HID_PAD), jnp.float32),       # sum(h^2)
        ],
        compiler_params=pltpu.CompilerParams(
            dimension_semantics=("arbitrary",),   # stats + h carry across tiles
            # 48 MiB: fits under v7x's 64 MiB physical VMEM while allowing
            # double-buffered 512x4096 f32 tiles + ~50K rows of h scratch.
            vmem_limit_bytes=48 << 20,
        ),
    )(fe, ffp, w1e, w1f, b1p, gamma_p, beta_p, wh, bh)

    d1 = out[:B, 0:D_OUT1]
    d2 = out[:B, D_OUT1:D_OUT1 + D_OUT2]
    return d1, d2


# --------------------------------------------------------------------------- #
# Synthetic params + pure-JAX reference
# --------------------------------------------------------------------------- #
def init_params(key):
    ks = jax.random.split(key, 6)
    # Linear weights stored as (in, out); deterministic synthetic init.
    w1 = jax.random.normal(ks[0], (D_IN, D_HID), jnp.float32) * 0.02
    b1 = jax.random.normal(ks[1], (D_HID,), jnp.float32) * 0.02
    gamma = jnp.ones((D_HID,), jnp.float32)      # BatchNorm1d weight init = 1
    beta = jnp.zeros((D_HID,), jnp.float32)      # BatchNorm1d bias init = 0
    wd1 = jax.random.normal(ks[2], (D_HID, D_OUT1), jnp.float32) * 0.1
    bd1 = jax.random.normal(ks[3], (D_OUT1,), jnp.float32) * 0.1
    wd2 = jax.random.normal(ks[4], (D_HID, D_OUT2), jnp.float32) * 0.1
    bd2 = jax.random.normal(ks[5], (D_OUT2,), jnp.float32) * 0.1
    return (w1, b1, gamma, beta, wd1, bd1, wd2, bd2)


def reference_forward(feature_e, feature_f, params):
    """Pure-JAX reference mirroring the PyTorch forward (train-mode BN).

    fc1 uses the same bf16-input / f32-accumulate precision as the kernel so
    the comparison isolates the Pallas implementation from the intentional
    bf16 cast of the dominant matmul.
    """
    w1, b1, gamma, beta, wd1, bd1, wd2, bd2 = params
    B = feature_e.shape[0]
    feat = jnp.concatenate([feature_e.reshape(B, -1), feature_f.reshape(B, -1)], 1)
    h = jnp.dot(feat.astype(jnp.bfloat16), w1.astype(jnp.bfloat16),
                preferred_element_type=jnp.float32) + b1.reshape(1, -1)
    mean = h.mean(axis=0, keepdims=True)
    var = ((h - mean) ** 2).mean(axis=0, keepdims=True)
    f_out = jnp.maximum((h - mean) * lax.rsqrt(var + EPS) * gamma.reshape(1, -1)
                        + beta.reshape(1, -1), 0.0)
    return f_out @ wd1 + bd1.reshape(1, -1), f_out @ wd2 + bd2.reshape(1, -1)


if __name__ == "__main__":
    key = jax.random.PRNGKey(0)
    k_e, k_f, k_p = jax.random.split(key, 3)

    B = 2
    feature_e = jax.random.normal(k_e, (B, 64, 8, 8), dtype=jnp.float32)
    feature_f = jax.random.normal(k_f, (B, 10), dtype=jnp.float32)
    params = init_params(k_p)
    prepared = prepare_params(params)

    fwd = jax.jit(domain_classifier_forward)
    d1, d2 = fwd(feature_e, feature_f, prepared)
    jax.block_until_ready((d1, d2))

    r1, r2 = reference_forward(feature_e, feature_f, params)
    assert d1.shape == (B, D_OUT1) and d2.shape == (B, D_OUT2)
    assert jnp.allclose(d1, r1, atol=1e-2, rtol=1e-2), (d1, r1)
    assert jnp.allclose(d2, r2, atol=1e-2, rtol=1e-2), (d2, r2)

    print("KERNEL_OK")
</pallas_src>

<mosaic_0001>
module attributes {stable_mosaic.version = 11 : i64} {
  func.func @_fused_kernel(%arg0: i32, %arg1: memref<8x4096xf32, #tpu.memory_space<vmem>>, %arg2: memref<8x128xf32, #tpu.memory_space<vmem>>, %arg3: memref<4096x128xbf16, #tpu.memory_space<vmem>>, %arg4: memref<128x128xbf16, #tpu.memory_space<vmem>>, %arg5: memref<1x128xf32, #tpu.memory_space<vmem>>, %arg6: memref<1x128xf32, #tpu.memory_space<vmem>>, %arg7: memref<1x128xf32, #tpu.memory_space<vmem>>, %arg8: memref<128x8xf32, #tpu.memory_space<vmem>>, %arg9: memref<1x8xf32, #tpu.memory_space<vmem>>, %arg10: memref<8x8xf32, #tpu.memory_space<vmem>>, %arg11: memref<8x128xf32, #tpu.memory_space<vmem>>, %arg12: memref<1x128xf32, #tpu.memory_space<vmem>>, %arg13: memref<1x128xf32, #tpu.memory_space<vmem>>) attributes {dimension_semantics = [#tpu.dimension_semantics<arbitrary>], iteration_bounds = array<i64: 1>, scalar_prefetch = 0 : i64, scratch_operands = 3 : i64, tpu.core_type = #tpu.core_type<tc>, window_params = [{transform_indices = @transform_0, window_bounds = array<i64: 8, 4096>}, {transform_indices = @transform_1, window_bounds = array<i64: 8, 128>}, {pipeline_mode = #tpu.pipeline_mode<synchronous>, transform_indices = @transform_2, window_bounds = array<i64: 4096, 128>}, {pipeline_mode = #tpu.pipeline_mode<synchronous>, transform_indices = @transform_3, window_bounds = array<i64: 128, 128>}, {pipeline_mode = #tpu.pipeline_mode<synchronous>, transform_indices = @transform_4, window_bounds = array<i64: 1, 128>}, {pipeline_mode = #tpu.pipeline_mode<synchronous>, transform_indices = @transform_5, window_bounds = array<i64: 1, 128>}, {pipeline_mode = #tpu.pipeline_mode<synchronous>, transform_indices = @transform_6, window_bounds = array<i64: 1, 128>}, {pipeline_mode = #tpu.pipeline_mode<synchronous>, transform_indices = @transform_7, window_bounds = array<i64: 128, 8>}, {pipeline_mode = #tpu.pipeline_mode<synchronous>, transform_indices = @transform_8, window_bounds = array<i64: 1, 8>}, {pipeline_mode = #tpu.pipeline_mode<synchronous>, transform_indices = @transform_9, window_bounds = array<i64: 8, 8>}]} {
    %c0_i32 = arith.constant 0 : i32
    %0 = arith.cmpi eq, %arg0, %c0_i32 : i32
    %1 = arith.extui %0 : i1 to i32
    %c0_i32_0 = arith.constant 0 : i32
    %2 = arith.cmpi ne, %1, %c0_i32_0 : i32
    scf.if %2 {
      %cst_18 = arith.constant 0.000000e+00 : f32
      %28 = vector.broadcast %cst_18 : f32 to vector<1x128xf32>
      %c0_19 = arith.constant 0 : index
      %c0_20 = arith.constant 0 : index
      %29 = vector.load %arg12[%c0_19, %c0_20] : memref<1x128xf32, #tpu.memory_space<vmem>>, vector<1x128xf32>
      tpu.vector_store %arg12[%c0_19, %c0_20], %28 {strides = array<i32>} : memref<1x128xf32, #tpu.memory_space<vmem>>, vector<1x128xf32>,
      %cst_21 = arith.constant 0.000000e+00 : f32
      %30 = vector.broadcast %cst_21 : f32 to vector<1x128xf32>
      %c0_22 = arith.constant 0 : index
      %c0_23 = arith.constant 0 : index
      %31 = vector.load %arg13[%c0_22, %c0_23] : memref<1x128xf32, #tpu.memory_space<vmem>>, vector<1x128xf32>
      tpu.vector_store %arg13[%c0_22, %c0_23], %30 {strides = array<i32>} : memref<1x128xf32, #tpu.memory_space<vmem>>, vector<1x128xf32>,
    } else {
    }
    %c0 = arith.constant 0 : index
    %c0_1 = arith.constant 0 : index
    %3 = vector.load %arg1[%c0, %c0_1] : memref<8x4096xf32, #tpu.memory_space<vmem>>, vector<8x4096xf32>
    %4 = arith.truncf %3 : vector<8x4096xf32> to vector<8x4096xbf16>
    %c0_2 = arith.constant 0 : index
    %c0_3 = arith.constant 0 : index
    %5 = vector.load %arg3[%c0_2, %c0_3] : memref<4096x128xbf16, #tpu.memory_space<vmem>>, vector<4096x128xbf16>
    %cst = arith.constant dense<0.000000e+00> : vector<8x128xf32>
    %6 = tpu.matmul %4, %5, %cst {dimension_numbers = #tpu.dot_dimension_numbers<[1], [0], [0], [1], [0, 0, 1, 1], [], []>} : vector<8x4096xbf16>, vector<4096x128xbf16>, vector<8x128xf32> -> vector<8x128xf32>
    %c0_4 = arith.constant 0 : index
    %c0_5 = arith.constant 0 : index
    %7 = vector.load %arg2[%c0_4, %c0_5] : memref<8x128xf32, #tpu.memory_space<vmem>>, vector<8x128xf32>
    %8 = arith.truncf %7 : vector<8x128xf32> to vector<8x128xbf16>
    %c0_6 = arith.constant 0 : index
    %c0_7 = arith.constant 0 : index
    %9 = vector.load %arg4[%c0_6, %c0_7] : memref<128x128xbf16, #tpu.memory_space<vmem>>, vector<128x128xbf16>
    %cst_8 = arith.constant dense<0.000000e+00> : vector<8x128xf32>
    %10 = tpu.matmul %8, %9, %cst_8 {dimension_numbers = #tpu.dot_dimension_numbers<[1], [0], [0], [1], [0, 0, 1, 1], [], []>} : vector<8x128xbf16>, vector<128x128xbf16>, vector<8x128xf32> -> vector<8x128xf32>
    %11 = arith.addf %6, %10 : vector<8x128xf32>
    %c0_9 = arith.constant 0 : index
    %c0_10 = arith.constant 0 : index
    %12 = vector.load %arg5[%c0_9, %c0_10] : memref<1x128xf32, #tpu.memory_space<vmem>>, vector<1x128xf32>
    %13 = vector.broadcast %12 : vector<1x128xf32> to vector<8x128xf32>
    %14 = arith.addf %11, %13 : vector<8x128xf32>
    %c8_i32 = arith.constant 8 : i32
    %15 = arith.muli %arg0, %c8_i32 : i32
    %16 = tpu.assume_multiple %15, 8 : i32
    %17 = arith.index_cast %16 : i32 to index
    %c0_11 = arith.constant 0 : index
    %18 = vector.load %arg11[%17, %c0_11] : memref<8x128xf32, #tpu.memory_space<vmem>>, vector<8x128xf32>
    tpu.vector_store %arg11[%17, %c0_11], %14 {strides = array<i32>} : memref<8x128xf32, #tpu.memory_space<vmem>>, vector<8x128xf32>,
    %c0_i32_12 = arith.constant 0 : i32
    %19 = arith.cmpi ne, %arg0, %c0_i32_12 : i32
    %20 = arith.extui %19 : i1 to i32
    %c0_i32_13 = arith.constant 0 : i32
    %21 = arith.cmpi ne, %20, %c0_i32_13 : i32
    scf.if %21 {
      %c0_18 = arith.constant 0 : index
      %c0_19 = arith.constant 0 : index
      %28 = vector.load %arg12[%c0_18, %c0_19] : memref<1x128xf32, #tpu.memory_space<vmem>>, vector<1x128xf32>
      %cst_20 = arith.constant dense<0.000000e+00> : vector<128xf32>
      %29 = vector.multi_reduction <add>, %14, %cst_20 [0] : vector<8x128xf32> to vector<128xf32>
      %30 = vector.shape_cast %29 : vector<128xf32> to vector<1x128xf32>
      %31 = arith.addf %28, %30 : vector<1x128xf32>
      %c0_21 = arith.constant 0 : index
      %c0_22 = arith.constant 0 : index
      %32 = vector.load %arg12[%c0_21, %c0_22] : memref<1x128xf32, #tpu.memory_space<vmem>>, vector<1x128xf32>
      tpu.vector_store %arg12[%c0_21, %c0_22], %31 {strides = array<i32>} : memref<1x128xf32, #tpu.memory_space<vmem>>, vector<1x128xf32>,
      %c0_23 = arith.constant 0 : index
      %c0_24 = arith.constant 0 : index
      %33 = vector.load %arg13[%c0_23, %c0_24] : memref<1x128xf32, #tpu.memory_space<vmem>>, vector<1x128xf32>
      %34 = arith.mulf %14, %14 : vector<8x128xf32>
      %cst_25 = arith.constant dense<0.000000e+00> : vector<128xf32>
      %35 = vector.multi_reduction <add>, %34, %cst_25 [0] : vector<8x128xf32> to vector<128xf32>
      %36 = vector.shape_cast %35 : vector<128xf32> to vector<1x128xf32>
      %37 = arith.addf %33, %36 : vector<1x128xf32>
      %c0_26 = arith.constant 0 : index
      %c0_27 = arith.constant 0 : index
      %38 = vector.load %arg13[%c0_26, %c0_27] : memref<1x128xf32, #tpu.memory_space<vmem>>, vector<1x128xf32>
      tpu.vector_store %arg13[%c0_26, %c0_27], %37 {strides = array<i32>} : memref<1x128xf32, #tpu.memory_space<vmem>>, vector<1x128xf32>,
    } else {
    }
    %c0_i32_14 = arith.constant 0 : i32
    %22 = arith.cmpi eq, %arg0, %c0_i32_14 : i32
    %23 = arith.extui %22 : i1 to i32
    %c0_i32_15 = arith.constant 0 : i32
    %24 = arith.cmpi ne, %23, %c0_i32_15 : i32
    scf.if %24 {
      %28 = tpu.iota {dimensions = array<i32: 0>} : vector<8x128xi32>
      %c8_i32_18 = arith.constant 8 : i32
      %29 = arith.muli %arg0, %c8_i32_18 : i32
      %30 = vector.broadcast %29 : i32 to vector<8x128xi32>
      %31 = arith.addi %28, %30 : vector<8x128xi32>
      %c2_i32 = arith.constant 2 : i32
      %32 = vector.broadcast %c2_i32 : i32 to vector<8x128xi32>
      %33 = arith.cmpi slt, %31, %32 : vector<8x128xi32>
      %cst_19 = arith.constant 0.000000e+00 : f32
      %34 = vector.broadcast %cst_19 : f32 to vector<8x128xf32>
      %35 = arith.select %33, %14, %34 : vector<8x128xi1>, vector<8x128xf32>
      %c0_20 = arith.constant 0 : index
      %c0_21 = arith.constant 0 : index
      %36 = vector.load %arg12[%c0_20, %c0_21] : memref<1x128xf32, #tpu.memory_space<vmem>>, vector<1x128xf32>
      %cst_22 = arith.constant dense<0.000000e+00> : vector<128xf32>
      %37 = vector.multi_reduction <add>, %35, %cst_22 [0] : vector<8x128xf32> to vector<128xf32>
      %38 = vector.shape_cast %37 : vector<128xf32> to vector<1x128xf32>
      %39 = arith.addf %36, %38 : vector<1x128xf32>
      %c0_23 = arith.constant 0 : index
      %c0_24 = arith.constant 0 : index
      %40 = vector.load %arg12[%c0_23, %c0_24] : memref<1x128xf32, #tpu.memory_space<vmem>>, vector<1x128xf32>
      tpu.vector_store %arg12[%c0_23, %c0_24], %39 {strides = array<i32>} : memref<1x128xf32, #tpu.memory_space<vmem>>, vector<1x128xf32>,
      %c0_25 = arith.constant 0 : index
      %c0_26 = arith.constant 0 : index
      %41 = vector.load %arg13[%c0_25, %c0_26] : memref<1x128xf32, #tpu.memory_space<vmem>>, vector<1x128xf32>
      %42 = arith.mulf %35, %35 : vector<8x128xf32>
      %cst_27 = arith.constant dense<0.000000e+00> : vector<128xf32>
      %43 = vector.multi_reduction <add>, %42, %cst_27 [0] : vector<8x128xf32> to vector<128xf32>
      %44 = vector.shape_cast %43 : vector<128xf32> to vector<1x128xf32>
      %45 = arith.addf %41, %44 : vector<1x128xf32>
      %c0_28 = arith.constant 0 : index
      %c0_29 = arith.constant 0 : index
      %46 = vector.load %arg13[%c0_28, %c0_29] : memref<1x128xf32, #tpu.memory_space<vmem>>, vector<1x128xf32>
      tpu.vector_store %arg13[%c0_28, %c0_29], %45 {strides = array<i32>} : memref<1x128xf32, #tpu.memory_space<vmem>>, vector<1x128xf32>,
    } else {
    }
    %c0_i32_16 = arith.constant 0 : i32
    %25 = arith.cmpi eq, %arg0, %c0_i32_16 : i32
    %26 = arith.extui %25 : i1 to i32
    %c0_i32_17 = arith.constant 0 : i32
    %27 = arith.cmpi ne, %26, %c0_i32_17 : i32
    scf.if %27 {
      %c0_18 = arith.constant 0 : index
      %c0_19 = arith.constant 0 : index
      %28 = vector.load %arg12[%c0_18, %c0_19] : memref<1x128xf32, #tpu.memory_space<vmem>>, vector<1x128xf32>
      %cst_20 = arith.constant 5.000000e-01 : f32
      %29 = vector.broadcast %cst_20 : f32 to vector<1x128xf32>
      %30 = arith.mulf %28, %29 : vector<1x128xf32>
      %c0_21 = arith.constant 0 : index
      %c0_22 = arith.constant 0 : index
      %31 = vector.load %arg13[%c0_21, %c0_22] : memref<1x128xf32, #tpu.memory_space<vmem>>, vector<1x128xf32>
      %cst_23 = arith.constant 5.000000e-01 : f32
      %32 = vector.broadcast %cst_23 : f32 to vector<1x128xf32>
      %33 = arith.mulf %31, %32 : vector<1x128xf32>
      %34 = arith.mulf %30, %30 : vector<1x128xf32>
      %35 = arith.subf %33, %34 : vector<1x128xf32>
      %cst_24 = arith.constant 0.000000e+00 : f32
      %36 = vector.broadcast %cst_24 : f32 to vector<1x128xf32>
      %37 = arith.maximumf %35, %36 : vector<1x128xf32>
      %c0_25 = arith.constant 0 : index
      %c0_26 = arith.constant 0 : index
      %38 = vector.load %arg6[%c0_25, %c0_26] : memref<1x128xf32, #tpu.memory_space<vmem>>, vector<1x128xf32>
      %cst_27 = arith.constant 9.99999974E-6 : f32
      %39 = vector.broadcast %cst_27 : f32 to vector<1x128xf32>
      %40 = arith.addf %37, %39 : vector<1x128xf32>
      %41 = math.rsqrt %40 : vector<1x128xf32>
      %42 = arith.mulf %38, %41 : vector<1x128xf32>
      %c0_28 = arith.constant 0 : index
      %c0_29 = arith.constant 0 : index
      %43 = vector.load %arg7[%c0_28, %c0_29] : memref<1x128xf32, #tpu.memory_space<vmem>>, vector<1x128xf32>
      %44 = arith.mulf %30, %42 : vector<1x128xf32>
      %45 = arith.subf %43, %44 : vector<1x128xf32>
      %c0_i32_30 = arith.constant 0 : i32
      %c8_i32_31 = arith.constant 8 : i32
      %46 = arith.muli %c0_i32_30, %c8_i32_31 : i32
      %47 = tpu.assume_multiple %46, 8 : i32
      %48 = arith.index_cast %47 : i32 to index
      %c0_32 = arith.constant 0 : index
      %49 = vector.load %arg11[%48, %c0_32] : memref<8x128xf32, #tpu.memory_space<vmem>>, vector<8x128xf32>
      %50 = vector.broadcast %42 : vector<1x128xf32> to vector<8x128xf32>
      %51 = arith.mulf %49, %50 : vector<8x128xf32>
      %52 = vector.broadcast %45 : vector<1x128xf32> to vector<8x128xf32>
      %53 = arith.addf %51, %52 : vector<8x128xf32>
      %cst_33 = arith.constant 0.000000e+00 : f32
      %54 = vector.broadcast %cst_33 : f32 to vector<8x128xf32>
      %55 = arith.maximumf %53, %54 : vector<8x128xf32>
      %c0_34 = arith.constant 0 : index
      %c0_35 = arith.constant 0 : index
      %56 = vector.load %arg8[%c0_34, %c0_35] : memref<128x8xf32, #tpu.memory_space<vmem>>, vector<128x8xf32>
      %cst_36 = arith.constant dense<0.000000e+00> : vector<8x8xf32>
      %57 = tpu.matmul %55, %56, %cst_36 {dimension_numbers = #tpu.dot_dimension_numbers<[1], [0], [0], [1], [0, 0, 1, 1], [], []>} : vector<8x128xf32>, vector<128x8xf32>, vector<8x8xf32> -> vector<8x8xf32>
      %c0_37 = arith.constant 0 : index
      %c0_38 = arith.constant 0 : index
      %58 = vector.load %arg9[%c0_37, %c0_38] : memref<1x8xf32, #tpu.memory_space<vmem>>, vector<1x8xf32>
      %59 = vector.broadcast %58 : vector<1x8xf32> to vector<8x8xf32>
      %60 = arith.addf %57, %59 : vector<8x8xf32>
      %61 = arith.index_cast %47 : i32 to index
      %c0_39 = arith.constant 0 : index
      %62 = vector.load %arg10[%61, %c0_39] : memref<8x8xf32, #tpu.memory_space<vmem>>, vector<8x8xf32>
      tpu.vector_store %arg10[%61, %c0_39], %60 {strides = array<i32>} : memref<8x8xf32, #tpu.memory_space<vmem>>, vector<8x8xf32>,
      %c1_i32 = arith.constant 1 : i32
    } else {
    }
    return
  }
  func.func @transform_0(%arg0: i32) -> (i32, i32) {
    %c0_i32 = arith.constant 0 : i32
    %c0_i32_0 = arith.constant 0 : i32
    return %arg0, %c0_i32 : i32, i32
  }
  func.func @transform_1(%arg0: i32) -> (i32, i32) {
    %c0_i32 = arith.constant 0 : i32
    %c0_i32_0 = arith.constant 0 : i32
    return %arg0, %c0_i32 : i32, i32
  }
  func.func @transform_2(%arg0: i32) -> (i32, i32) {
    %c0_i32 = arith.constant 0 : i32
    %c0_i32_0 = arith.constant 0 : i32
    %c0_i32_1 = arith.constant 0 : i32
    return %c0_i32, %c0_i32_0 : i32, i32
  }
  func.func @transform_3(%arg0: i32) -> (i32, i32) {
    %c0_i32 = arith.constant 0 : i32
    %c0_i32_0 = arith.constant 0 : i32
    %c0_i32_1 = arith.constant 0 : i32
    return %c0_i32, %c0_i32_0 : i32, i32
  }
  func.func @transform_4(%arg0: i32) -> (i32, i32) {
    %c0_i32 = arith.constant 0 : i32
    %c0_i32_0 = arith.constant 0 : i32
    %c0_i32_1 = arith.constant 0 : i32
    return %c0_i32, %c0_i32_0 : i32, i32
  }
  func.func @transform_5(%arg0: i32) -> (i32, i32) {
    %c0_i32 = arith.constant 0 : i32
    %c0_i32_0 = arith.constant 0 : i32
    %c0_i32_1 = arith.constant 0 : i32
    return %c0_i32, %c0_i32_0 : i32, i32
  }
  func.func @transform_6(%arg0: i32) -> (i32, i32) {
    %c0_i32 = arith.constant 0 : i32
    %c0_i32_0 = arith.constant 0 : i32
    %c0_i32_1 = arith.constant 0 : i32
    return %c0_i32, %c0_i32_0 : i32, i32
  }
  func.func @transform_7(%arg0: i32) -> (i32, i32) {
    %c0_i32 = arith.constant 0 : i32
    %c0_i32_0 = arith.constant 0 : i32
    %c0_i32_1 = arith.constant 0 : i32
    return %c0_i32, %c0_i32_0 : i32, i32
  }
  func.func @transform_8(%arg0: i32) -> (i32, i32) {
    %c0_i32 = arith.constant 0 : i32
    %c0_i32_0 = arith.constant 0 : i32
    %c0_i32_1 = arith.constant 0 : i32
    return %c0_i32, %c0_i32_0 : i32, i32
  }
  func.func @transform_9(%arg0: i32) -> (i32, i32) {
    %c0_i32 = arith.constant 0 : i32
    %c0_i32_0 = arith.constant 0 : i32
    %c0_i32_1 = arith.constant 0 : i32
    return %c0_i32, %c0_i32_0 : i32, i32
  }
}

</mosaic_0001>

<bundles_post_ra>
// kernel: domain_classifier_forward.1
= control target key start
LH: loop header
LB: loop body
LE: loop exit
PB: predicated region body
PF: predicated region fallthrough
CT: control target
= control target key end

     0   :  { %vm2912_vm4 = vcmask 64512   ;;  %s5258_s3 = inlined_call_operand.vmem [shape: bf16[128,128], index: 3, kind: input, shape index: {}]   ;;  %s5259_s2 = inlined_call_operand.vmem [shape: bf16[4096,128], index: 2, kind: input, shape index: {}]   ;;  %s5260_s0 = inlined_call_operand.vmem [shape: f32[2,4096], index: 0, kind: input, shape index: {}]   ;;  %s5261_s1 = inlined_call_operand.vmem [shape: f32[2,128], index: 1, kind: input, shape index: {}]   ;;  %s5262_s4 = inlined_call_operand.vmem [shape: f32[1,128], index: 4, kind: input, shape index: {}]   ;;  %s5263_s8 = inlined_call_operand.vmem [shape: f32[1,8], index: 8, kind: input, shape index: {}]   ;;  %s5264_s7 = inlined_call_operand.vmem [shape: f32[128,8], index: 7, kind: input, shape index: {}]   ;;  %s5265_s5 = inlined_call_operand.vmem [shape: f32[1,128], index: 5, kind: input, shape index: {}]   ;;  %s5266_s6 = inlined_call_operand.vmem [shape: f32[1,128], index: 6, kind: input, shape index: {}]   ;;  %s5267_s9 = inlined_call_operand.vmem [shape: f32[8,8], index: 9, kind: output, shape index: {}]  }
   0x1   :  { %v4237_v0 = vld [vmem:[%s5258_s3 + $0x38] sm:$0xff]  ;;  %v4236_v4 = vld [vmem:[%s5258_s3 + $0x30] sm:$0xff]  ;;  %v4235_v8 = vld [vmem:[%s5258_s3 + $0x28] sm:$0xff] }
   0x2   :  { %v3989_v1 = vld [vmem:[%s5259_s2 + $0x78] sm:$0xff]  ;;  %815 = vmatpush.bf16.msra.mxu0 %v4237_v0  ;;  %v3988_v5 = vld [vmem:[%s5259_s2 + $0x70] sm:$0xff]  ;;  %v3987_v9 = vld [vmem:[%s5259_s2 + $0x68] sm:$0xff] }
   0x3   :  { %v3981_v2 = vld [vmem:[%s5259_s2 + $0x38] sm:$0xff]  ;;  %2377 = vmatpush.bf16.msra.mxu2 %v3989_v1  ;;  %v3980_v6 = vld [vmem:[%s5259_s2 + $0x30] sm:$0xff]  ;;  %v3979_v10 = vld [vmem:[%s5259_s2 + $0x28] sm:$0xff] }
   0x4   :  { %v3997_v3 = vld [vmem:[%s5259_s2 + $0xb8] sm:$0xff]  ;;  %2364 = vmatpush.bf16.msra.mxu1 %v3981_v2  ;;  %v3996_v7 = vld [vmem:[%s5259_s2 + $0xb0] sm:$0xff]  ;;  %v3995_v11 = vld [vmem:[%s5259_s2 + $0xa8] sm:$0xff] }
   0x5   :  { %2390 = vmatpush.bf16.msra.mxu3 %v3997_v3  ;;  %v4234_v12 = vld [vmem:[%s5258_s3 + $0x20] sm:$0xff]  ;;  %v4233_v16 = vld [vmem:[%s5258_s3 + $0x18] sm:$0xff]  ;;  %v4232_v24 = vld [vmem:[%s5258_s3 + $0x10] sm:$0xff] }
   0x6   :  { %816 = vmatpush.bf16.msra.mxu0 %v4236_v4  ;;  %v3986_v13 = vld [vmem:[%s5259_s2 + $0x60] sm:$0xff]  ;;  %v3985_v17 = vld [vmem:[%s5259_s2 + $0x58] sm:$0xff]  ;;  %v3984_v25 = vld [vmem:[%s5259_s2 + $0x50] sm:$0xff] }
   0x7   :  { %2378 = vmatpush.bf16.msra.mxu2 %v3988_v5  ;;  %v3978_v14 = vld [vmem:[%s5259_s2 + $0x20] sm:$0xff]  ;;  %v3977_v18 = vld [vmem:[%s5259_s2 + $0x18] sm:$0xff]  ;;  %v3976_v26 = vld [vmem:[%s5259_s2 + $0x10] sm:$0xff] }
   0x8   :  { %2365 = vmatpush.bf16.msra.mxu1 %v3980_v6  ;;  %v3994_v15 = vld [vmem:[%s5259_s2 + $0xa0] sm:$0xff]  ;;  %v3993_v19 = vld [vmem:[%s5259_s2 + $0x98] sm:$0xff]  ;;  %v3992_v27 = vld [vmem:[%s5259_s2 + $0x90] sm:$0xff] }
   0x9   :  { %2391 = vmatpush.bf16.msra.mxu3 %v3996_v7  ;;  %v38_v20 = vld [vmem:[%s5260_s0] sm:$0xff]  ;;  %v4231_v28 = vld [vmem:[%s5258_s3 + $0x8] sm:$0xff]  ;;  %v4005_v38 = vld [vmem:[%s5259_s2 + $0xf8] sm:$0xff] }
   0xa   :  { %817 = vmatpush.bf16.msra.mxu0 %v4235_v8  ;;  %v46_v21 = vld [vmem:[%s5260_s0 + $0x40] sm:$0xff]  ;;  %102 = vst [vmem:[#allocation1] ss:$4 sm:$0xff] %v38_v20  ;;  %v3983_v29 = vld [vmem:[%s5259_s2 + $0x48] sm:$0xff]  ;;  %v4021_v39 = vld [vmem:[%s5259_s2 + $0x178] sm:$0xff] }
   0xb   :  { %2379 = vmatpush.bf16.msra.mxu2 %v3987_v9  ;;  %v54_v22 = vld [vmem:[%s5260_s0 + $0x80] sm:$0xff]  ;;  %104 = vst [vmem:[#allocation1 + $0x1] ss:$4 sm:$0xff] %v46_v21  ;;  %v39_v30 = vld [vmem:[%s5260_s0 + $0x8] sm:$0xff]  ;;  %v4013_v44 = vld [vmem:[%s5259_s2 + $0x138] sm:$0xff] }
   0xc   :  { %2366 = vmatpush.bf16.msra.mxu1 %v3979_v10  ;;  %v62_v23 = vld [vmem:[%s5260_s0 + $0xc0] sm:$0xff]  ;;  %106 = vst [vmem:[#allocation1 + $0x2] ss:$4 sm:$0xff] %v54_v22  ;;  %v47_v31 = vld [vmem:[%s5260_s0 + $0x48] sm:$0xff]  ;;  %v4029_v45 = vld [vmem:[%s5259_s2 + $0x1b8] sm:$0xff] }
   0xd   :  { %2392 = vmatpush.bf16.msra.mxu3 %v3995_v11  ;;  %108 = vst [vmem:[#allocation1 + $0x3] ss:$4 sm:$0xff] %v62_v23  ;;  %v55_v32 = vld [vmem:[%s5260_s0 + $0x88] sm:$0xff]  ;;  %v4230_v36 = vld [vmem:[%s5258_s3] sm:$0xff]  ;;  %v4004_v50 = vld [vmem:[%s5259_s2 + $0xf0] sm:$0xff] }
   0xe   :  { %818 = vmatpush.bf16.msra.mxu0 %v4234_v12  ;;  %v63_v33 = vld [vmem:[%s5260_s0 + $0xc8] sm:$0xff]  ;;  %110 = vst [vmem:[#allocation1 + $0x20] ss:$4 sm:$0xff] %v39_v30  ;;  %v3982_v37 = vld [vmem:[%s5259_s2 + $0x40] sm:$0xff]  ;;  %v4020_v51 = vld [vmem:[%s5259_s2 + $0x170] sm:$0xff] }
   0xf   :  { %2380 = vmatpush.bf16.msra.mxu2 %v3986_v13  ;;  %v3975_v34 = vld [vmem:[%s5259_s2 + $0x8] sm:$0xff]  ;;  %112 = vst [vmem:[#allocation1 + $0x21] ss:$4 sm:$0xff] %v47_v31  ;;  %v3974_v40 = vld [vmem:[%s5259_s2] sm:$0xff]  ;;  %v4012_v54 = vld [vmem:[%s5259_s2 + $0x130] sm:$0xff] }
  0x10   :  { %2367 = vmatpush.bf16.msra.mxu1 %v3978_v14  ;;  %v3991_v35 = vld [vmem:[%s5259_s2 + $0x88] sm:$0xff]  ;;  %114 = vst [vmem:[#allocation1 + $0x22] ss:$4 sm:$0xff] %v55_v32  ;;  %v749_v42 = vld [vmem:[%s5261_s1] sm:$0xff]  ;;  %v4028_v55 = vld [vmem:[%s5259_s2 + $0x1b0] sm:$0xff] }
  0x11   :  { %2393 = vmatpush.bf16.msra.mxu3 %v3994_v15  ;;  %116 = vst [vmem:[#allocation1 + $0x23] ss:$4 sm:$0xff] %v63_v33  ;;  %v3990_v43 = vld [vmem:[%s5259_s2 + $0x80] sm:$0xff]  ;;  %v750_v49 = vpack.c.bf16 %v749_v42, %v749_v42  ;;  %v4003_v56 = vld [vmem:[%s5259_s2 + $0xe8] sm:$0xff]  ;;  %v4001_v0 = vld [vmem:[%s5259_s2 + $0xd8] sm:$0xff] }
  0x12   :  { %819 = vmatpush.bf16.msra.mxu0 %v4233_v16  ;;  %v4019_v57 = vld [vmem:[%s5259_s2 + $0x168] sm:$0xff]  ;;  %v4002_v60 = vld [vmem:[%s5259_s2 + $0xe0] sm:$0xff]  ;;  %v4017_v1 = vld [vmem:[%s5259_s2 + $0x158] sm:$0xff] }
  0x13   :  { %2381 = vmatpush.bf16.msra.mxu2 %v3985_v17  ;;  %v4011_v58 = vld [vmem:[%s5259_s2 + $0x128] sm:$0xff]  ;;  %v4018_v61 = vld [vmem:[%s5259_s2 + $0x160] sm:$0xff]  ;;  %v4009_v2 = vld [vmem:[%s5259_s2 + $0x118] sm:$0xff] }
  0x14   :  { %2368 = vmatpush.bf16.msra.mxu1 %v3977_v18  ;;  %v118_v41 = vld.sshfl [vmem:[#allocation1 + $0x8] sm:$0xff pattern:$0x73625140]  ;;  %v119_v46 = vld.sshfl [vmem:[#allocation1 + $0x10] sm:$0xff pattern:$0x73625140] }
  0x15   :  { %2394 = vmatpush.bf16.msra.mxu3 %v3993_v19  ;;  %v117_v47 = vld.sshfl [vmem:[#allocation1] sm:$0xff pattern:$0x73625140]  ;;  %v206_v48 = vpack.c.bf16 %v118_v41, %v118_v41  ;;  %v207_v52 = vpack.c.bf16 %v119_v46, %v119_v46  ;;  %v4027_v59 = vld [vmem:[%s5259_s2 + $0x1a8] sm:$0xff]  ;;  %v4025_v3 = vld [vmem:[%s5259_s2 + $0x198] sm:$0xff] }
  0x16   :  { %820 = vmatpush.bf16.msra.mxu0 %v4232_v24  ;;  %v205_v53 = vpack.c.bf16 %v117_v47, %v117_v47  ;;  %v4010_v62 = vld [vmem:[%s5259_s2 + $0x120] sm:$0xff]  ;;  %v4000_v4 = vld [vmem:[%s5259_s2 + $0xd0] sm:$0xff]  ;;  %v120_v8 = vld.sshfl [vmem:[#allocation1 + $0x18] sm:$0xff pattern:$0x73625140] }
  0x17   :  { %2382 = vmatpush.bf16.msra.mxu2 %v3984_v25  ;;  %v4026_v63 = vld [vmem:[%s5259_s2 + $0x1a0] sm:$0xff]  ;;  %v4016_v5 = vld [vmem:[%s5259_s2 + $0x150] sm:$0xff]  ;;  %v3999_v13 = vld [vmem:[%s5259_s2 + $0xc8] sm:$0xff] }
  0x18   :  { %2369 = vmatpush.bf16.msra.mxu1 %v3976_v26  ;;  %v4008_v6 = vld [vmem:[%s5259_s2 + $0x110] sm:$0xff]  ;;  %v4015_v14 = vld [vmem:[%s5259_s2 + $0x148] sm:$0xff]  ;;  %v3998_v17 = vld [vmem:[%s5259_s2 + $0xc0] sm:$0xff] }
  0x19   :  { %2395 = vmatpush.bf16.msra.mxu3 %v3992_v27  ;;  %v4024_v7 = vld [vmem:[%s5259_s2 + $0x190] sm:$0xff]  ;;  %v4007_v15 = vld [vmem:[%s5259_s2 + $0x108] sm:$0xff]  ;;  %v4014_v18 = vld [vmem:[%s5259_s2 + $0x140] sm:$0xff] }
  0x1a   :  { %821 = vmatpush.bf16.msra.mxu0 %v4231_v28  ;;  %v40_v9 = vld [vmem:[%s5260_s0 + $0x10] sm:$0xff]  ;;  %v4023_v16 = vld [vmem:[%s5259_s2 + $0x188] sm:$0xff]  ;;  %v4037_v19 = vld [vmem:[%s5259_s2 + $0x1f8] sm:$0xff] }
  0x1b   :  { %2383 = vmatpush.bf16.msra.mxu2 %v3983_v29  ;;  %v48_v10 = vld [vmem:[%s5260_s0 + $0x50] sm:$0xff]  ;;  %125 = vst [vmem:[#allocation1] ss:$4 sm:$0xff] %v40_v9  ;;  %v4053_v20 = vld [vmem:[%s5259_s2 + $0x278] sm:$0xff]  ;;  %v4006_v21 = vld [vmem:[%s5259_s2 + $0x100] sm:$0xff]  ;;  %v208_v29 = vpack.c.bf16 %v120_v8, %v120_v8 }
  0x1c   :  { %2370 = vmatpush.bf16.msra.mxu1 %v3975_v34  ;;  %v56_v11 = vld [vmem:[%s5260_s0 + $0x90] sm:$0xff]  ;;  %126 = vst [vmem:[#allocation1 + $0x1] ss:$4 sm:$0xff] %v48_v10  ;;  %v122_v22 = vld.sshfl [vmem:[#allocation1 + $0x28] sm:$0xff pattern:$0x73625140] }
  0x1d   :  { %2396 = vmatpush.bf16.msra.mxu3 %v3991_v35  ;;  %v64_v12 = vld [vmem:[%s5260_s0 + $0xd0] sm:$0xff]  ;;  %127 = vst [vmem:[#allocation1 + $0x2] ss:$4 sm:$0xff] %v56_v11  ;;  %v4022_v23 = vld [vmem:[%s5259_s2 + $0x180] sm:$0xff]  ;;  %v4045_v24 = vld [vmem:[%s5259_s2 + $0x238] sm:$0xff]  ;;  %v210_v28 = vpack.c.bf16 %v122_v22, %v122_v22 }
  0x1e   :  { %822 = vmatpush.bf16.msra.mxu0 %v4230_v36  ;;  %128 = vst [vmem:[#allocation1 + $0x3] ss:$4 sm:$0xff] %v64_v12  ;;  %v4061_v25 = vld [vmem:[%s5259_s2 + $0x2b8] sm:$0xff]  ;;  %v123_v26 = vld.sshfl [vmem:[#allocation1 + $0x30] sm:$0xff pattern:$0x73625140] }
  0x1f   :  { %2384 = vmatpush.bf16.msra.mxu2 %v3982_v37  ;;  %v121_v27 = vld.sshfl [vmem:[#allocation1 + $0x20] sm:$0xff pattern:$0x73625140]  ;;  %v4036_v30 = vld [vmem:[%s5259_s2 + $0x1f0] sm:$0xff]  ;;  %v211_v32 = vpack.c.bf16 %v123_v26, %v123_v26  ;;  %v4035_v36 = vld [vmem:[%s5259_s2 + $0x1e8] sm:$0xff] }
  0x20   :  { %2371 = vmatpush.bf16.msra.mxu1 %v3974_v40  ;;  %v4052_v31 = vld [vmem:[%s5259_s2 + $0x270] sm:$0xff]  ;;  %v209_v33 = vpack.c.bf16 %v121_v27, %v121_v27  ;;  %v4051_v37 = vld [vmem:[%s5259_s2 + $0x268] sm:$0xff]  ;;  %v4034_v40 = vld [vmem:[%s5259_s2 + $0x1e0] sm:$0xff] }
  0x21   :  { %2397 = vmatpush.bf16.msra.mxu3 %v3990_v43  ;;  %823 = vmatmul.bf16.vlgmr.msra.gmra.mxu0 %v750_v49  ;;  %v4044_v34 = vld [vmem:[%s5259_s2 + $0x230] sm:$0xff]  ;;  %v4050_v41 = vld [vmem:[%s5259_s2 + $0x260] sm:$0xff]  ;;  %v4041_v46 = vld [vmem:[%s5259_s2 + $0x218] sm:$0xff] }
  0x22   :  { %2403 = vmatpush.bf16.msrb.mxu0 %v4005_v38  ;;  %2385 = vmatmul.bf16.vlgmr.msra.gmra.mxu2 %v206_v48  ;;  %v4060_v35 = vld [vmem:[%s5259_s2 + $0x2b0] sm:$0xff]  ;;  %v4043_v38 = vld [vmem:[%s5259_s2 + $0x228] sm:$0xff]  ;;  %v4042_v42 = vld [vmem:[%s5259_s2 + $0x220] sm:$0xff] }
  0x23   :  { %2429 = vmatpush.bf16.msrb.mxu2 %v4021_v39  ;;  %2372 = vmatmul.bf16.vlgmr.msra.gmra.mxu1 %v205_v53  ;;  %v4059_v39 = vld [vmem:[%s5259_s2 + $0x2a8] sm:$0xff]  ;;  %v4058_v43 = vld [vmem:[%s5259_s2 + $0x2a0] sm:$0xff]  ;;  %v4057_v47 = vld [vmem:[%s5259_s2 + $0x298] sm:$0xff] }
  0x24   :  { %2416 = vmatpush.bf16.msrb.mxu1 %v4013_v44  ;;  %2398 = vmatmul.bf16.vlgmr.msra.gmra.mxu3 %v207_v52  ;;  %v4033_v44 = vld [vmem:[%s5259_s2 + $0x1d8] sm:$0xff]  ;;  %v4032_v48 = vld [vmem:[%s5259_s2 + $0x1d0] sm:$0xff]  ;;  %v4074_v22 = vld [vmem:[%s5259_s2 + $0x320] sm:$0xff] }
  0x25   :  { %2442 = vmatpush.bf16.msrb.mxu3 %v4029_v45  ;;  %v4049_v45 = vld [vmem:[%s5259_s2 + $0x258] sm:$0xff]  ;;  %v4048_v49 = vld [vmem:[%s5259_s2 + $0x250] sm:$0xff] }
  0x26   :  { %2404 = vmatpush.bf16.msrb.mxu0 %v4004_v50  ;;  %v4040_v50 = vld [vmem:[%s5259_s2 + $0x210] sm:$0xff]  ;;  %v124_v52 = vld.sshfl [vmem:[#allocation1 + $0x38] sm:$0xff pattern:$0x73625140] }
  0x27   :  { %2430 = vmatpush.bf16.msrb.mxu2 %v4020_v51  ;;  %v4056_v51 = vld [vmem:[%s5259_s2 + $0x290] sm:$0xff]  ;;  %v41_v53 = vld [vmem:[%s5260_s0 + $0x18] sm:$0xff] }
  0x28   :  { %2417 = vmatpush.bf16.msrb.mxu1 %v4012_v54  ;;  %v49_v54 = vld [vmem:[%s5260_s0 + $0x58] sm:$0xff]  ;;  %129 = vst [vmem:[#allocation1 + $0x20] ss:$4 sm:$0xff] %v41_v53  ;;  %v4068_v12 = vld [vmem:[%s5259_s2 + $0x2f0] sm:$0xff] }
  0x29   :  { %2443 = vmatpush.bf16.msrb.mxu3 %v4028_v55  ;;  %v57_v55 = vld [vmem:[%s5260_s0 + $0x98] sm:$0xff]  ;;  %130 = vst [vmem:[#allocation1 + $0x21] ss:$4 sm:$0xff] %v49_v54 }
  0x2a   :  { %2405 = vmatpush.bf16.msrb.mxu0 %v4003_v56  ;;  %v65_v56 = vld [vmem:[%s5260_s0 + $0xd8] sm:$0xff]  ;;  %131 = vst [vmem:[#allocation1 + $0x22] ss:$4 sm:$0xff] %v57_v55 }
  0x2b   :  { %2431 = vmatpush.bf16.msrb.mxu2 %v4019_v57  ;;  %v4031_v57 = vld [vmem:[%s5259_s2 + $0x1c8] sm:$0xff]  ;;  %132 = vst [vmem:[#allocation1 + $0x23] ss:$4 sm:$0xff] %v65_v56  ;;  %v4077_v8 = vld [vmem:[%s5259_s2 + $0x338] sm:$0xff]  ;;  %v4100_v56 = vld [vmem:[%s5259_s2 + $0x3f0] sm:$0xff] }
  0x2c   :  { %2418 = vmatpush.bf16.msrb.mxu1 %v4011_v58  ;;  %v4047_v58 = vld [vmem:[%s5259_s2 + $0x248] sm:$0xff]  ;;  %v4093_v9 = vld [vmem:[%s5259_s2 + $0x3b8] sm:$0xff] }
  0x2d   :  { %2444 = vmatpush.bf16.msrb.mxu3 %v4027_v59  ;;  %v4039_v59 = vld [vmem:[%s5259_s2 + $0x208] sm:$0xff]  ;;  %v4073_v26 = vld [vmem:[%s5259_s2 + $0x318] sm:$0xff] }
  0x2e   :  { %2406 = vmatpush.bf16.msrb.mxu0 %v4002_v60  ;;  %v4055_v60 = vld [vmem:[%s5259_s2 + $0x288] sm:$0xff]  ;;  %v4089_v27 = vld [vmem:[%s5259_s2 + $0x398] sm:$0xff] }
  0x2f   :  { %2432 = vmatpush.bf16.msrb.mxu2 %v4018_v61  ;;  %v4030_v61 = vld [vmem:[%s5259_s2 + $0x1c0] sm:$0xff]  ;;  %v4125_v53 = vld [vmem:[%s5259_s2 + $0x4b8] sm:$0xff] }
  0x30   :  { %2419 = vmatpush.bf16.msrb.mxu1 %v4010_v62  ;;  %v4046_v62 = vld [vmem:[%s5259_s2 + $0x240] sm:$0xff] }
  0x31   :  { %2445 = vmatpush.bf16.msrb.mxu3 %v4026_v63  ;;  %v4069_v63 = vld [vmem:[%s5259_s2 + $0x2f8] sm:$0xff] }
  0x32   :  { %2407 = vmatpush.bf16.msrb.mxu0 %v4001_v0  ;;  %v134_v0 = vld.sshfl [vmem:[#allocation1 + $0x8] sm:$0xff pattern:$0x73625140] }
  0x33   :  { %2433 = vmatpush.bf16.msrb.mxu2 %v4017_v1  ;;  %v4085_v1 = vld [vmem:[%s5259_s2 + $0x378] sm:$0xff] }
  0x34   :  { %2420 = vmatpush.bf16.msrb.mxu1 %v4009_v2  ;;  %v4038_v2 = vld [vmem:[%s5259_s2 + $0x200] sm:$0xff] }
  0x35   :  { %2446 = vmatpush.bf16.msrb.mxu3 %v4025_v3  ;;  %v4054_v3 = vld [vmem:[%s5259_s2 + $0x280] sm:$0xff] }
  0x36   :  { %2408 = vmatpush.bf16.msrb.mxu0 %v4000_v4  ;;  %v133_v4 = vld.sshfl [vmem:[#allocation1] sm:$0xff pattern:$0x73625140] }
  0x37   :  { %2434 = vmatpush.bf16.msrb.mxu2 %v4016_v5  ;;  %v135_v5 = vld.sshfl [vmem:[#allocation1 + $0x10] sm:$0xff pattern:$0x73625140]  ;;  %v213_v10 = vpack.c.bf16 %v133_v4, %v133_v4  ;;  %v4097_v4 = vld [vmem:[%s5259_s2 + $0x3d8] sm:$0xff] }
  0x38   :  { %2421 = vmatpush.bf16.msrb.mxu1 %v4008_v6  ;;  %v212_v6 = vpack.c.bf16 %v124_v52, %v124_v52  ;;  %v215_v11 = vpack.c.bf16 %v135_v5, %v135_v5  ;;  %v4109_v52 = vld [vmem:[%s5259_s2 + $0x438] sm:$0xff] }
  0x39   :  { %2447 = vmatpush.bf16.msrb.mxu3 %v4024_v7  ;;  %v214_v7 = vpack.c.bf16 %v134_v0, %v134_v0  ;;  %v4098_v0 = vld [vmem:[%s5259_s2 + $0x3e0] sm:$0xff]  ;;  %v4113_v5 = vld [vmem:[%s5259_s2 + $0x458] sm:$0xff] }
  0x3a   :  { %2409 = vmatpush.bf16.msrb.mxu0 %v3999_v13  ;;  %v4084_v13 = vld [vmem:[%s5259_s2 + $0x370] sm:$0xff] }
  0x3b   :  { %2435 = vmatpush.bf16.msrb.mxu2 %v4015_v14  ;;  %v4076_v14 = vld [vmem:[%s5259_s2 + $0x330] sm:$0xff] }
  0x3c   :  { %2422 = vmatpush.bf16.msrb.mxu1 %v4007_v15  ;;  %v4092_v15 = vld [vmem:[%s5259_s2 + $0x3b0] sm:$0xff] }
  0x3d   :  { %2448 = vmatpush.bf16.msrb.mxu3 %v4023_v16  ;;  %v4067_v16 = vld [vmem:[%s5259_s2 + $0x2e8] sm:$0xff] }
  0x3e   :  { %2410 = vmatpush.bf16.msrb.mxu0 %v3998_v17  ;;  %v4083_v17 = vld [vmem:[%s5259_s2 + $0x368] sm:$0xff] }
  0x3f   :  { %2436 = vmatpush.bf16.msrb.mxu2 %v4014_v18  ;;  %v4075_v18 = vld [vmem:[%s5259_s2 + $0x328] sm:$0xff] }
  0x40   :  { %2423 = vmatpush.bf16.msrb.mxu1 %v4006_v21  ;;  %v4082_v21 = vld [vmem:[%s5259_s2 + $0x360] sm:$0xff] }
  0x41   :  { %2449 = vmatpush.bf16.msrb.mxu3 %v4022_v23  ;;  %2411 = vmatmul.bf16.vlgmr.msrb.gmra.mxu0 %v208_v29  ;;  %v4090_v23 = vld [vmem:[%s5259_s2 + $0x3a0] sm:$0xff]  ;;  %v4080_v29 = vld [vmem:[%s5259_s2 + $0x350] sm:$0xff] }
  0x42   :  { %2455 = vmatpush.bf16.msra.mxu0 %v4037_v19  ;;  %2437 = vmatmul.bf16.vlgmr.msrb.gmra.mxu2 %v210_v28  ;;  %v4091_v19 = vld [vmem:[%s5259_s2 + $0x3a8] sm:$0xff]  ;;  %v4064_v28 = vld [vmem:[%s5259_s2 + $0x2d0] sm:$0xff] }
  0x43   :  { %2481 = vmatpush.bf16.msra.mxu2 %v4053_v20  ;;  %2424 = vmatmul.bf16.vlgmr.msrb.gmra.mxu1 %v209_v33  ;;  %v4066_v20 = vld [vmem:[%s5259_s2 + $0x2e0] sm:$0xff] }
  0x44   :  { %2468 = vmatpush.bf16.msra.mxu1 %v4045_v24  ;;  %2450 = vmatmul.bf16.vlgmr.msrb.gmra.mxu3 %v211_v32  ;;  %v4065_v24 = vld [vmem:[%s5259_s2 + $0x2d8] sm:$0xff]  ;;  %v42_v33 = vld [vmem:[%s5260_s0 + $0x20] sm:$0xff] }
  0x45   :  { %2494 = vmatpush.bf16.msra.mxu3 %v4061_v25  ;;  %v4081_v25 = vld [vmem:[%s5259_s2 + $0x358] sm:$0xff] }
  0x46   :  { %2456 = vmatpush.bf16.msra.mxu0 %v4036_v30  ;;  %v4072_v30 = vld [vmem:[%s5259_s2 + $0x310] sm:$0xff]  ;;  %v136_v32 = vld.sshfl [vmem:[#allocation1 + $0x18] sm:$0xff pattern:$0x73625140] }
  0x47   :  { %2482 = vmatpush.bf16.msra.mxu2 %v4052_v31  ;;  %v4088_v31 = vld [vmem:[%s5259_s2 + $0x390] sm:$0xff]  ;;  %141 = vst [vmem:[#allocation1] ss:$4 sm:$0xff] %v42_v33  ;;  %v4157_v33 = vld [vmem:[%s5259_s2 + $0x5b8] sm:$0xff] }
  0x48   :  { %2469 = vmatpush.bf16.msra.mxu1 %v4044_v34  ;;  %v50_v34 = vld [vmem:[%s5260_s0 + $0x60] sm:$0xff] }
  0x49   :  { %2495 = vmatpush.bf16.msra.mxu3 %v4060_v35  ;;  %v58_v35 = vld [vmem:[%s5260_s0 + $0xa0] sm:$0xff]  ;;  %142 = vst [vmem:[#allocation1 + $0x1] ss:$4 sm:$0xff] %v50_v34 }
  0x4a   :  { %2457 = vmatpush.bf16.msra.mxu0 %v4035_v36  ;;  %v66_v36 = vld [vmem:[%s5260_s0 + $0xe0] sm:$0xff]  ;;  %143 = vst [vmem:[#allocation1 + $0x2] ss:$4 sm:$0xff] %v58_v35 }
  0x4b   :  { %2483 = vmatpush.bf16.msra.mxu2 %v4051_v37  ;;  %v4063_v37 = vld [vmem:[%s5259_s2 + $0x2c8] sm:$0xff]  ;;  %144 = vst [vmem:[#allocation1 + $0x3] ss:$4 sm:$0xff] %v66_v36  ;;  %v4132_v36 = vld [vmem:[%s5259_s2 + $0x4f0] sm:$0xff] }
  0x4c   :  { %2470 = vmatpush.bf16.msra.mxu1 %v4043_v38  ;;  %v4079_v38 = vld [vmem:[%s5259_s2 + $0x348] sm:$0xff] }
  0x4d   :  { %2496 = vmatpush.bf16.msra.mxu3 %v4059_v39  ;;  %v4071_v39 = vld [vmem:[%s5259_s2 + $0x308] sm:$0xff] }
  0x4e   :  { %2458 = vmatpush.bf16.msra.mxu0 %v4034_v40  ;;  %v4087_v40 = vld [vmem:[%s5259_s2 + $0x388] sm:$0xff] }
  0x4f   :  { %2484 = vmatpush.bf16.msra.mxu2 %v4050_v41  ;;  %v4062_v41 = vld [vmem:[%s5259_s2 + $0x2c0] sm:$0xff] }
  0x50   :  { %2471 = vmatpush.bf16.msra.mxu1 %v4042_v42  ;;  %v4078_v42 = vld [vmem:[%s5259_s2 + $0x340] sm:$0xff] }
  0x51   :  { %2497 = vmatpush.bf16.msra.mxu3 %v4058_v43  ;;  %v4101_v43 = vld [vmem:[%s5259_s2 + $0x3f8] sm:$0xff] }
  0x52   :  { %2459 = vmatpush.bf16.msra.mxu0 %v4033_v44  ;;  %v138_v44 = vld.sshfl [vmem:[#allocation1 + $0x28] sm:$0xff pattern:$0x73625140] }
  0x53   :  { %2485 = vmatpush.bf16.msra.mxu2 %v4049_v45  ;;  %v4117_v45 = vld [vmem:[%s5259_s2 + $0x478] sm:$0xff] }
  0x54   :  { %2472 = vmatpush.bf16.msra.mxu1 %v4041_v46  ;;  %v4070_v46 = vld [vmem:[%s5259_s2 + $0x300] sm:$0xff] }
  0x55   :  { %2498 = vmatpush.bf16.msra.mxu3 %v4057_v47  ;;  %v4086_v47 = vld [vmem:[%s5259_s2 + $0x380] sm:$0xff] }
  0x56   :  { %2460 = vmatpush.bf16.msra.mxu0 %v4032_v48  ;;  %v137_v48 = vld.sshfl [vmem:[#allocation1 + $0x20] sm:$0xff pattern:$0x73625140] }
  0x57   :  { %2486 = vmatpush.bf16.msra.mxu2 %v4048_v49  ;;  %v139_v49 = vld.sshfl [vmem:[#allocation1 + $0x30] sm:$0xff pattern:$0x73625140]  ;;  %v217_v54 = vpack.c.bf16 %v137_v48, %v137_v48  ;;  %v4154_v48 = vld [vmem:[%s5259_s2 + $0x5a0] sm:$0xff] }
  0x58   :  { %2473 = vmatpush.bf16.msra.mxu1 %v4040_v50  ;;  %v216_v50 = vpack.c.bf16 %v136_v32, %v136_v32  ;;  %v219_v55 = vpack.c.bf16 %v139_v49, %v139_v49  ;;  %v4141_v32 = vld [vmem:[%s5259_s2 + $0x538] sm:$0xff] }
  0x59   :  { %2499 = vmatpush.bf16.msra.mxu3 %v4056_v51  ;;  %v218_v51 = vpack.c.bf16 %v138_v44, %v138_v44  ;;  %v4130_v44 = vld [vmem:[%s5259_s2 + $0x4e0] sm:$0xff] }
  0x5a   :  { %2461 = vmatpush.bf16.msra.mxu0 %v4031_v57  ;;  %v4116_v57 = vld [vmem:[%s5259_s2 + $0x470] sm:$0xff] }
  0x5b   :  { %2487 = vmatpush.bf16.msra.mxu2 %v4047_v58  ;;  %v4108_v58 = vld [vmem:[%s5259_s2 + $0x430] sm:$0xff] }
  0x5c   :  { %2474 = vmatpush.bf16.msra.mxu1 %v4039_v59  ;;  %v4124_v59 = vld [vmem:[%s5259_s2 + $0x4b0] sm:$0xff] }
  0x5d   :  { %2500 = vmatpush.bf16.msra.mxu3 %v4055_v60  ;;  %v4099_v60 = vld [vmem:[%s5259_s2 + $0x3e8] sm:$0xff] }
  0x5e   :  { %2462 = vmatpush.bf16.msra.mxu0 %v4030_v61  ;;  %v4115_v61 = vld [vmem:[%s5259_s2 + $0x468] sm:$0xff] }
  0x5f   :  { %2488 = vmatpush.bf16.msra.mxu2 %v4046_v62  ;;  %v4107_v62 = vld [vmem:[%s5259_s2 + $0x428] sm:$0xff] }
  0x60   :  { %2475 = vmatpush.bf16.msra.mxu1 %v4038_v2  ;;  %v4106_v2 = vld [vmem:[%s5259_s2 + $0x420] sm:$0xff] }
  0x61   :  { %2501 = vmatpush.bf16.msra.mxu3 %v4054_v3  ;;  %2463 = vmatmul.bf16.vlgmr.msra.gmra.mxu0 %v212_v6  ;;  %v4122_v3 = vld [vmem:[%s5259_s2 + $0x4a0] sm:$0xff]  ;;  %v4105_v6 = vld [vmem:[%s5259_s2 + $0x418] sm:$0xff] }
  0x62   :  { %2507 = vmatpush.bf16.msrb.mxu0 %v4069_v63  ;;  %2489 = vmatmul.bf16.vlgmr.msra.gmra.mxu2 %v214_v7  ;;  %v4123_v63 = vld [vmem:[%s5259_s2 + $0x4a8] sm:$0xff]  ;;  %v4121_v7 = vld [vmem:[%s5259_s2 + $0x498] sm:$0xff] }
  0x63   :  { %2533 = vmatpush.bf16.msrb.mxu2 %v4085_v1  ;;  %2476 = vmatmul.bf16.vlgmr.msra.gmra.mxu1 %v213_v10  ;;  %v4114_v1 = vld [vmem:[%s5259_s2 + $0x460] sm:$0xff]  ;;  %v4104_v10 = vld [vmem:[%s5259_s2 + $0x410] sm:$0xff] }
  0x64   :  { %2520 = vmatpush.bf16.msrb.mxu1 %v4077_v8  ;;  %2502 = vmatmul.bf16.vlgmr.msra.gmra.mxu3 %v215_v11  ;;  %v4096_v8 = vld [vmem:[%s5259_s2 + $0x3d0] sm:$0xff] }
  0x65   :  { %2546 = vmatpush.bf16.msrb.mxu3 %v4093_v9  ;;  %v4112_v9 = vld [vmem:[%s5259_s2 + $0x450] sm:$0xff] }
  0x66   :  { %2508 = vmatpush.bf16.msrb.mxu0 %v4068_v12  ;;  %v4120_v11 = vld [vmem:[%s5259_s2 + $0x490] sm:$0xff]  ;;  %v140_v12 = vld.sshfl [vmem:[#allocation1 + $0x38] sm:$0xff pattern:$0x73625140] }
  0x67   :  { %2534 = vmatpush.bf16.msrb.mxu2 %v4084_v13  ;;  %v43_v13 = vld [vmem:[%s5260_s0 + $0x28] sm:$0xff] }
  0x68   :  { %2521 = vmatpush.bf16.msrb.mxu1 %v4076_v14  ;;  %v51_v14 = vld [vmem:[%s5260_s0 + $0x68] sm:$0xff]  ;;  %145 = vst [vmem:[#allocation1 + $0x20] ss:$4 sm:$0xff] %v43_v13  ;;  %v4165_v13 = vld [vmem:[%s5259_s2 + $0x5f8] sm:$0xff] }
  0x69   :  { %2547 = vmatpush.bf16.msrb.mxu3 %v4092_v15  ;;  %v59_v15 = vld [vmem:[%s5260_s0 + $0xa8] sm:$0xff]  ;;  %146 = vst [vmem:[#allocation1 + $0x21] ss:$4 sm:$0xff] %v51_v14 }
  0x6a   :  { %2509 = vmatpush.bf16.msrb.mxu0 %v4067_v16  ;;  %v67_v16 = vld [vmem:[%s5260_s0 + $0xe8] sm:$0xff]  ;;  %147 = vst [vmem:[#allocation1 + $0x22] ss:$4 sm:$0xff] %v59_v15  ;;  %v4181_v15 = vld [vmem:[%s5259_s2 + $0x678] sm:$0xff] }
  0x6b   :  { %2535 = vmatpush.bf16.msrb.mxu2 %v4083_v17  ;;  %v4095_v17 = vld [vmem:[%s5259_s2 + $0x3c8] sm:$0xff]  ;;  %148 = vst [vmem:[#allocation1 + $0x23] ss:$4 sm:$0xff] %v67_v16  ;;  %v4134_v16 = vld [vmem:[%s5259_s2 + $0x500] sm:$0xff] }
  0x6c   :  { %2522 = vmatpush.bf16.msrb.mxu1 %v4075_v18  ;;  %v4111_v18 = vld [vmem:[%s5259_s2 + $0x448] sm:$0xff] }
  0x6d   :  { %2548 = vmatpush.bf16.msrb.mxu3 %v4091_v19  ;;  %v4103_v19 = vld [vmem:[%s5259_s2 + $0x408] sm:$0xff] }
  0x6e   :  { %2510 = vmatpush.bf16.msrb.mxu0 %v4066_v20  ;;  %v4119_v20 = vld [vmem:[%s5259_s2 + $0x488] sm:$0xff] }
  0x6f   :  { %2536 = vmatpush.bf16.msrb.mxu2 %v4082_v21  ;;  %v4094_v21 = vld [vmem:[%s5259_s2 + $0x3c0] sm:$0xff] }
  0x70   :  { %2523 = vmatpush.bf16.msrb.mxu1 %v4074_v22  ;;  %v4110_v22 = vld [vmem:[%s5259_s2 + $0x440] sm:$0xff] }
  0x71   :  { %2549 = vmatpush.bf16.msrb.mxu3 %v4090_v23  ;;  %v4133_v23 = vld [vmem:[%s5259_s2 + $0x4f8] sm:$0xff] }
  0x72   :  { %2511 = vmatpush.bf16.msrb.mxu0 %v4065_v24  ;;  %v150_v24 = vld.sshfl [vmem:[#allocation1 + $0x8] sm:$0xff pattern:$0x73625140] }
  0x73   :  { %2537 = vmatpush.bf16.msrb.mxu2 %v4081_v25  ;;  %v4149_v25 = vld [vmem:[%s5259_s2 + $0x578] sm:$0xff]  ;;  %v154_v14 = vld.sshfl [vmem:[#allocation1 + $0x28] sm:$0xff pattern:$0x73625140] }
  0x74   :  { %2524 = vmatpush.bf16.msrb.mxu1 %v4073_v26  ;;  %v4102_v26 = vld [vmem:[%s5259_s2 + $0x400] sm:$0xff] }
  0x75   :  { %2550 = vmatpush.bf16.msrb.mxu3 %v4089_v27  ;;  %v4118_v27 = vld [vmem:[%s5259_s2 + $0x480] sm:$0xff] }
  0x76   :  { %2512 = vmatpush.bf16.msrb.mxu0 %v4064_v28  ;;  %v149_v28 = vld.sshfl [vmem:[#allocation1] sm:$0xff pattern:$0x73625140] }
  0x77   :  { %2538 = vmatpush.bf16.msrb.mxu2 %v4080_v29  ;;  %v151_v29 = vld.sshfl [vmem:[#allocation1 + $0x10] sm:$0xff pattern:$0x73625140]  ;;  %v221_v34 = vpack.c.bf16 %v149_v28, %v149_v28 }
  0x78   :  { %2525 = vmatpush.bf16.msrb.mxu1 %v4072_v30  ;;  %v220_v30 = vpack.c.bf16 %v140_v12, %v140_v12  ;;  %v223_v35 = vpack.c.bf16 %v151_v29, %v151_v29  ;;  %v4142_v12 = vld [vmem:[%s5259_s2 + $0x540] sm:$0xff]  ;;  %v4180_v28 = vld [vmem:[%s5259_s2 + $0x670] sm:$0xff] }
  0x79   :  { %2551 = vmatpush.bf16.msrb.mxu3 %v4088_v31  ;;  %v222_v31 = vpack.c.bf16 %v150_v24, %v150_v24  ;;  %v4189_v24 = vld [vmem:[%s5259_s2 + $0x6b8] sm:$0xff]  ;;  %v4172_v29 = vld [vmem:[%s5259_s2 + $0x630] sm:$0xff] }
  0x7a   :  { %2513 = vmatpush.bf16.msrb.mxu0 %v4063_v37  ;;  %v4148_v37 = vld [vmem:[%s5259_s2 + $0x570] sm:$0xff] }
  0x7b   :  { %2539 = vmatpush.bf16.msrb.mxu2 %v4079_v38  ;;  %v4140_v38 = vld [vmem:[%s5259_s2 + $0x530] sm:$0xff] }
  0x7c   :  { %2526 = vmatpush.bf16.msrb.mxu1 %v4071_v39  ;;  %v4156_v39 = vld [vmem:[%s5259_s2 + $0x5b0] sm:$0xff] }
  0x7d   :  { %2552 = vmatpush.bf16.msrb.mxu3 %v4087_v40  ;;  %v4131_v40 = vld [vmem:[%s5259_s2 + $0x4e8] sm:$0xff] }
  0x7e   :  { %2514 = vmatpush.bf16.msrb.mxu0 %v4062_v41  ;;  %v4147_v41 = vld [vmem:[%s5259_s2 + $0x568] sm:$0xff] }
  0x7f   :  { %2540 = vmatpush.bf16.msrb.mxu2 %v4078_v42  ;;  %v4139_v42 = vld [vmem:[%s5259_s2 + $0x528] sm:$0xff] }
  0x80   :  { %2527 = vmatpush.bf16.msrb.mxu1 %v4070_v46 }
  0x81   :  { %2553 = vmatpush.bf16.msrb.mxu3 %v4086_v47  ;;  %2515 = vmatmul.bf16.vlgmr.msrb.gmra.mxu0 %v216_v50  ;;  %v4138_v47 = vld [vmem:[%s5259_s2 + $0x520] sm:$0xff]  ;;  %v4129_v50 = vld [vmem:[%s5259_s2 + $0x4d8] sm:$0xff] }
  0x82   :  { %2559 = vmatpush.bf16.msra.mxu0 %v4101_v43  ;;  %2541 = vmatmul.bf16.vlgmr.msrb.gmra.mxu2 %v218_v51  ;;  %v4155_v43 = vld [vmem:[%s5259_s2 + $0x5a8] sm:$0xff]  ;;  %v4145_v51 = vld [vmem:[%s5259_s2 + $0x558] sm:$0xff] }
  0x83   :  { %2585 = vmatpush.bf16.msra.mxu2 %v4117_v45  ;;  %2528 = vmatmul.bf16.vlgmr.msrb.gmra.mxu1 %v217_v54  ;;  %v4146_v45 = vld [vmem:[%s5259_s2 + $0x560] sm:$0xff]  ;;  %v4153_v54 = vld [vmem:[%s5259_s2 + $0x598] sm:$0xff] }
  0x84   :  { %2572 = vmatpush.bf16.msra.mxu1 %v4109_v52  ;;  %2554 = vmatmul.bf16.vlgmr.msrb.gmra.mxu3 %v219_v55 }
  0x85   :  { %2598 = vmatpush.bf16.msra.mxu3 %v4125_v53  ;;  %v4137_v53 = vld [vmem:[%s5259_s2 + $0x518] sm:$0xff] }
  0x86   :  { %2560 = vmatpush.bf16.msra.mxu0 %v4100_v56  ;;  %v4128_v56 = vld [vmem:[%s5259_s2 + $0x4d0] sm:$0xff] }
  0x87   :  { %2586 = vmatpush.bf16.msra.mxu2 %v4116_v57  ;;  %v4144_v57 = vld [vmem:[%s5259_s2 + $0x550] sm:$0xff] }
  0x88   :  { %2573 = vmatpush.bf16.msra.mxu1 %v4108_v58 }
  0x89   :  { %2599 = vmatpush.bf16.msra.mxu3 %v4124_v59  ;;  %v4136_v59 = vld [vmem:[%s5259_s2 + $0x510] sm:$0xff] }
  0x8a   :  { %2561 = vmatpush.bf16.msra.mxu0 %v4099_v60 }
  0x8b   :  { %2587 = vmatpush.bf16.msra.mxu2 %v4115_v61 }
  0x8c   :  { %2574 = vmatpush.bf16.msra.mxu1 %v4107_v62  ;;  %v4152_v62 = vld [vmem:[%s5259_s2 + $0x590] sm:$0xff] }
  0x8d   :  { %2600 = vmatpush.bf16.msra.mxu3 %v4123_v63  ;;  %v152_v63 = vld.sshfl [vmem:[#allocation1 + $0x18] sm:$0xff pattern:$0x73625140] }
  0x8e   :  { %2562 = vmatpush.bf16.msra.mxu0 %v4098_v0 }
  0x8f   :  { %2588 = vmatpush.bf16.msra.mxu2 %v4114_v1  ;;  %v44_v1 = vld [vmem:[%s5260_s0 + $0x30] sm:$0xff] }
  0x90   :  { %2575 = vmatpush.bf16.msra.mxu1 %v4106_v2  ;;  %157 = vst [vmem:[#allocation1] ss:$4 sm:$0xff] %v44_v1  ;;  %v4183_v1 = vld [vmem:[%s5259_s2 + $0x688] sm:$0xff] }
  0x91   :  { %2601 = vmatpush.bf16.msra.mxu3 %v4122_v3  ;;  %v52_v3 = vld [vmem:[%s5260_s0 + $0x70] sm:$0xff] }
  0x92   :  { %2563 = vmatpush.bf16.msra.mxu0 %v4097_v4  ;;  %v60_v4 = vld [vmem:[%s5260_s0 + $0xb0] sm:$0xff]  ;;  %158 = vst [vmem:[#allocation1 + $0x1] ss:$4 sm:$0xff] %v52_v3  ;;  %v4158_v3 = vld [vmem:[%s5259_s2 + $0x5c0] sm:$0xff] }
  0x93   :  { %2589 = vmatpush.bf16.msra.mxu2 %v4113_v5  ;;  %v68_v5 = vld [vmem:[%s5260_s0 + $0xf0] sm:$0xff]  ;;  %159 = vst [vmem:[#allocation1 + $0x2] ss:$4 sm:$0xff] %v60_v4  ;;  %v4174_v4 = vld [vmem:[%s5259_s2 + $0x640] sm:$0xff] }
  0x94   :  { %2576 = vmatpush.bf16.msra.mxu1 %v4105_v6  ;;  %v4127_v6 = vld [vmem:[%s5259_s2 + $0x4c8] sm:$0xff]  ;;  %160 = vst [vmem:[#allocation1 + $0x3] ss:$4 sm:$0xff] %v68_v5  ;;  %v4197_v5 = vld [vmem:[%s5259_s2 + $0x6f8] sm:$0xff] }
  0x95   :  { %2602 = vmatpush.bf16.msra.mxu3 %v4121_v7  ;;  %v4143_v7 = vld [vmem:[%s5259_s2 + $0x548] sm:$0xff] }
  0x96   :  { %2564 = vmatpush.bf16.msra.mxu0 %v4096_v8  ;;  %v4135_v8 = vld [vmem:[%s5259_s2 + $0x508] sm:$0xff] }
  0x97   :  { %2590 = vmatpush.bf16.msra.mxu2 %v4112_v9  ;;  %v4151_v9 = vld [vmem:[%s5259_s2 + $0x588] sm:$0xff] }
  0x98   :  { %2577 = vmatpush.bf16.msra.mxu1 %v4104_v10  ;;  %v4126_v10 = vld [vmem:[%s5259_s2 + $0x4c0] sm:$0xff] }
  0x99   :  { %2603 = vmatpush.bf16.msra.mxu3 %v4120_v11 }
  0x9a   :  { %2565 = vmatpush.bf16.msra.mxu0 %v4095_v17  ;;  %v4150_v17 = vld [vmem:[%s5259_s2 + $0x580] sm:$0xff] }
  0x9b   :  { %2591 = vmatpush.bf16.msra.mxu2 %v4111_v18 }
  0x9c   :  { %2578 = vmatpush.bf16.msra.mxu1 %v4103_v19  ;;  %v153_v19 = vld.sshfl [vmem:[#allocation1 + $0x20] sm:$0xff pattern:$0x73625140] }
  0x9d   :  { %2604 = vmatpush.bf16.msra.mxu3 %v4119_v20  ;;  %v155_v20 = vld.sshfl [vmem:[#allocation1 + $0x30] sm:$0xff pattern:$0x73625140] }
  0x9e   :  { %2566 = vmatpush.bf16.msra.mxu0 %v4094_v21  ;;  %v824_v46 = vpop.f32.mrf.mxu0  ;;  %v224_v21 = vpack.c.bf16 %v152_v63, %v152_v63  ;;  %v4175_v63 = vld [vmem:[%s5259_s2 + $0x648] sm:$0xff] }
  0x9f   :  { %2592 = vmatpush.bf16.msra.mxu2 %v4110_v22  ;;  %v226_v22 = vpack.c.bf16 %v154_v14, %v154_v14 }
  0xa0   :  { %2579 = vmatpush.bf16.msra.mxu1 %v4102_v26  ;;  %v2373_v49 = vpop.f32.mrf.mxu1  ;;  %v227_v26 = vpack.c.bf16 %v155_v20, %v155_v20  ;;  %v4212_v20 = vld [vmem:[%s5259_s2 + $0x770] sm:$0xff] }
  0xa1   :  { %2605 = vmatpush.bf16.msra.mxu3 %v4118_v27  ;;  %2567 = vmatmul.bf16.vlgmr.msra.gmra.mxu0 %v220_v30  ;;  %v2374_v52 = vadd.f32 %v2373_v49, %v824_v46  ;;  %v4164_v27 = vld [vmem:[%s5259_s2 + $0x5f0] sm:$0xff]  ;;  %v4185_v46 = vld [vmem:[%s5259_s2 + $0x698] sm:$0xff] }
  0xa2   :  { %2611 = vmatpush.bf16.msrb.mxu0 %v4133_v23  ;;  %2593 = vmatmul.bf16.vlgmr.msra.gmra.mxu2 %v222_v31  ;;  %v4173_v23 = vld [vmem:[%s5259_s2 + $0x638] sm:$0xff]  ;;  %v4188_v30 = vld [vmem:[%s5259_s2 + $0x6b0] sm:$0xff]  ;;  %v4163_v31 = vld [vmem:[%s5259_s2 + $0x5e8] sm:$0xff] }
  0xa3   :  { %2637 = vmatpush.bf16.msrb.mxu2 %v4149_v25  ;;  %2580 = vmatmul.bf16.vlgmr.msra.gmra.mxu1 %v221_v34  ;;  %v225_v25 = vpack.c.bf16 %v153_v19, %v153_v19  ;;  %v4187_v34 = vld [vmem:[%s5259_s2 + $0x6a8] sm:$0xff]  ;;  %v4160_v49 = vld [vmem:[%s5259_s2 + $0x5d0] sm:$0xff] }
  0xa4   :  { %2624 = vmatpush.bf16.msrb.mxu1 %v4141_v32  ;;  %2606 = vmatmul.bf16.vlgmr.msra.gmra.mxu3 %v223_v35  ;;  %v4179_v32 = vld [vmem:[%s5259_s2 + $0x668] sm:$0xff]  ;;  %v4162_v35 = vld [vmem:[%s5259_s2 + $0x5e0] sm:$0xff]  ;;  %v4196_v19 = vld [vmem:[%s5259_s2 + $0x6f0] sm:$0xff] }
  0xa5   :  { %2650 = vmatpush.bf16.msrb.mxu3 %v4157_v33  ;;  %v2386_v55 = vpop.f32.mrf.mxu2  ;;  %v4171_v33 = vld [vmem:[%s5259_s2 + $0x628] sm:$0xff] }
  0xa6   :  { %2612 = vmatpush.bf16.msrb.mxu0 %v4132_v36  ;;  %v2387_v58 = vadd.f32 %v2386_v55, %v2374_v52  ;;  %v826_v61 = vpop.f32.mrf.mxu0  ;;  %v4178_v36 = vld [vmem:[%s5259_s2 + $0x660] sm:$0xff]  ;;  %v4184_v55 = vld [vmem:[%s5259_s2 + $0x690] sm:$0xff] }
  0xa7   :  { %2638 = vmatpush.bf16.msrb.mxu2 %v4148_v37  ;;  %v2399_v60 = vpop.f32.mrf.mxu3  ;;  %v69_v61 = vld [vmem:[%s5260_s0 + $0xf8] sm:$0xff] }
  0xa8   :  { %2625 = vmatpush.bf16.msrb.mxu1 %v4140_v38  ;;  %v4921_v0 = vadd.f32 %v2399_v60, %v2387_v58  ;;  %v2375_v2 = vpop.f32.mrf.mxu1  ;;  %v45_v58 = vld [vmem:[%s5260_s0 + $0x38] sm:$0xff] }
  0xa9   :  { %2651 = vmatpush.bf16.msrb.mxu3 %v4156_v39  ;;  %v4170_v39 = vld [vmem:[%s5259_s2 + $0x620] sm:$0xff]  ;;  %v61_v60 = vld [vmem:[%s5260_s0 + $0xb8] sm:$0xff] }
  0xaa   :  { %2613 = vmatpush.bf16.msrb.mxu0 %v4131_v40  ;;  %v4186_v40 = vld [vmem:[%s5259_s2 + $0x6a0] sm:$0xff] }
  0xab   :  { %2639 = vmatpush.bf16.msrb.mxu2 %v4147_v41 }
  0xac   :  { %2626 = vmatpush.bf16.msrb.mxu1 %v4139_v42 }
  0xad   :  { %2652 = vmatpush.bf16.msrb.mxu3 %v4155_v43  ;;  %v2388_v11 = vpop.f32.mrf.mxu2  ;;  %v4161_v43 = vld [vmem:[%s5259_s2 + $0x5d8] sm:$0xff] }
  0xae   :  { %2614 = vmatpush.bf16.msrb.mxu0 %v4130_v44  ;;  %v4177_v44 = vld [vmem:[%s5259_s2 + $0x658] sm:$0xff]  ;;  %v165_v11 = vld.sshfl [vmem:[#allocation1] sm:$0xff pattern:$0x73625140] }
  0xaf   :  { %2640 = vmatpush.bf16.msrb.mxu2 %v4146_v45  ;;  %v2401_v18 = vpop.f32.mrf.mxu3  ;;  %v4169_v45 = vld [vmem:[%s5259_s2 + $0x618] sm:$0xff] }
  0xb0   :  { %2627 = vmatpush.bf16.msrb.mxu1 %v4138_v47 }
  0xb1   :  { %2653 = vmatpush.bf16.msrb.mxu3 %v4154_v48 }
  0xb2   :  { %2615 = vmatpush.bf16.msrb.mxu0 %v4129_v50  ;;  %v4176_v50 = vld [vmem:[%s5259_s2 + $0x650] sm:$0xff] }
  0xb3   :  { %2641 = vmatpush.bf16.msrb.mxu2 %v4145_v51 }
  0xb4   :  { %2628 = vmatpush.bf16.msrb.mxu1 %v4137_v53 }
  0xb5   :  { %2654 = vmatpush.bf16.msrb.mxu3 %v4153_v54  ;;  %v4168_v54 = vld [vmem:[%s5259_s2 + $0x610] sm:$0xff] }
  0xb6   :  { %2616 = vmatpush.bf16.msrb.mxu0 %v4128_v56  ;;  %v156_v56 = vld.sshfl [vmem:[#allocation1 + $0x38] sm:$0xff pattern:$0x73625140] }
  0xb7   :  { %2642 = vmatpush.bf16.msrb.mxu2 %v4144_v57  ;;  %161 = vst [vmem:[#allocation1 + $0x20] ss:$4 sm:$0xff] %v45_v58 }
  0xb8   :  { %2629 = vmatpush.bf16.msrb.mxu1 %v4136_v59  ;;  %v53_v59 = vld [vmem:[%s5260_s0 + $0x78] sm:$0xff]  ;;  %163 = vst [vmem:[#allocation1 + $0x22] ss:$4 sm:$0xff] %v61_v60  ;;  %v4198_v60 = vld [vmem:[%s5259_s2 + $0x700] sm:$0xff] }
  0xb9   :  { %2655 = vmatpush.bf16.msrb.mxu3 %v4152_v62  ;;  %v4159_v62 = vld [vmem:[%s5259_s2 + $0x5c8] sm:$0xff]  ;;  %162 = vst [vmem:[#allocation1 + $0x21] ss:$4 sm:$0xff] %v53_v59  ;;  %v4229_v59 = vld [vmem:[%s5259_s2 + $0x7f8] sm:$0xff] }
  0xba   :  { %2617 = vmatpush.bf16.msrb.mxu0 %v4127_v6  ;;  %164 = vst [vmem:[#allocation1 + $0x23] ss:$4 sm:$0xff] %v69_v61  ;;  %v166_v6 = vld.sshfl [vmem:[#allocation1 + $0x8] sm:$0xff pattern:$0x73625140]  ;;  %v4214_v61 = vld [vmem:[%s5259_s2 + $0x780] sm:$0xff] }
  0xbb   :  { %2643 = vmatpush.bf16.msrb.mxu2 %v4143_v7  ;;  %v230_v14 = vpack.c.bf16 %v166_v6, %v166_v6 }
  0xbc   :  { %2630 = vmatpush.bf16.msrb.mxu1 %v4135_v8  ;;  %v4213_v8 = vld [vmem:[%s5259_s2 + $0x778] sm:$0xff] }
  0xbd   :  { %2656 = vmatpush.bf16.msrb.mxu3 %v4151_v9  ;;  %v4166_v9 = vld [vmem:[%s5259_s2 + $0x600] sm:$0xff] }
  0xbe   :  { %2618 = vmatpush.bf16.msrb.mxu0 %v4126_v10  ;;  %v2412_v37 = vpop.f32.mrf.mxu0  ;;  %v4182_v10 = vld [vmem:[%s5259_s2 + $0x680] sm:$0xff] }
  0xbf   :  { %2644 = vmatpush.bf16.msrb.mxu2 %v4142_v12  ;;  %v2413_v38 = vadd.f32 %v2412_v37, %v4921_v0  ;;  %v4167_v0 = vld [vmem:[%s5259_s2 + $0x608] sm:$0xff]  ;;  %v167_v12 = vld.sshfl [vmem:[#allocation1 + $0x10] sm:$0xff pattern:$0x73625140] }
  0xc0   :  { %2631 = vmatpush.bf16.msrb.mxu1 %v4134_v16  ;;  %v2425_v41 = vpop.f32.mrf.mxu1  ;;  %v4221_v16 = vld [vmem:[%s5259_s2 + $0x7b8] sm:$0xff]  ;;  %v231_v18 = vpack.c.bf16 %v167_v12, %v167_v12 }
  0xc1   :  { %2657 = vmatpush.bf16.msrb.mxu3 %v4150_v17  ;;  %2619 = vmatmul.bf16.vlgmr.msrb.gmra.mxu0 %v224_v21  ;;  %v2426_v42 = vadd.f32 %v2425_v41, %v2413_v38  ;;  %v229_v17 = vpack.c.bf16 %v165_v11, %v165_v11  ;;  %v4204_v21 = vld [vmem:[%s5259_s2 + $0x730] sm:$0xff]  ;;  %v170_v58 = vld.sshfl [vmem:[#allocation1 + $0x28] sm:$0xff pattern:$0x73625140]  ;;  %v4225_v11 = vld [vmem:[%s5259_s2 + $0x7d8] sm:$0xff] }
  0xc2   :  { %2663 = vmatpush.bf16.msra.mxu0 %v4165_v13  ;;  %2645 = vmatmul.bf16.vlgmr.msrb.gmra.mxu2 %v226_v22  ;;  %v228_v13 = vpack.c.bf16 %v156_v56, %v156_v56  ;;  %v4220_v22 = vld [vmem:[%s5259_s2 + $0x7b0] sm:$0xff]  ;;  %v4206_v56 = vld [vmem:[%s5259_s2 + $0x740] sm:$0xff] }
  0xc3   :  { %2689 = vmatpush.bf16.msra.mxu2 %v4181_v15  ;;  %2632 = vmatmul.bf16.vlgmr.msrb.gmra.mxu1 %v225_v25  ;;  %v4205_v15 = vld [vmem:[%s5259_s2 + $0x738] sm:$0xff]  ;;  %v4203_v25 = vld [vmem:[%s5259_s2 + $0x728] sm:$0xff] }
  0xc4   :  { %2676 = vmatpush.bf16.msra.mxu1 %v4173_v23  ;;  %2658 = vmatmul.bf16.vlgmr.msrb.gmra.mxu3 %v227_v26  ;;  %v4195_v23 = vld [vmem:[%s5259_s2 + $0x6e8] sm:$0xff] }
  0xc5   :  { %2702 = vmatpush.bf16.msra.mxu3 %v4189_v24  ;;  %v2438_v47 = vpop.f32.mrf.mxu2  ;;  %v4211_v24 = vld [vmem:[%s5259_s2 + $0x768] sm:$0xff] }
  0xc6   :  { %2664 = vmatpush.bf16.msra.mxu0 %v4164_v27  ;;  %v2439_v48 = vadd.f32 %v2438_v47, %v2426_v42  ;;  %v2414_v52 = vpop.f32.mrf.mxu0  ;;  %v4219_v26 = vld [vmem:[%s5259_s2 + $0x7a8] sm:$0xff]  ;;  %v4200_v47 = vld [vmem:[%s5259_s2 + $0x710] sm:$0xff] }
  0xc7   :  { %2690 = vmatpush.bf16.msra.mxu2 %v4180_v28  ;;  %v2451_v51 = vpop.f32.mrf.mxu3  ;;  %v4199_v52 = vld [vmem:[%s5259_s2 + $0x708] sm:$0xff] }
  0xc8   :  { %2677 = vmatpush.bf16.msra.mxu1 %v4172_v29  ;;  %v5026_v53 = vadd.f32 %v2451_v51, %v2439_v48  ;;  %v2427_v57 = vpop.f32.mrf.mxu1  ;;  %v4194_v29 = vld [vmem:[%s5259_s2 + $0x6e0] sm:$0xff]  ;;  %v4216_v48 = vld [vmem:[%s5259_s2 + $0x790] sm:$0xff] }
  0xc9   :  { %2703 = vmatpush.bf16.msra.mxu3 %v4188_v30  ;;  %v4210_v30 = vld [vmem:[%s5259_s2 + $0x760] sm:$0xff]  ;;  %v168_v57 = vld.sshfl [vmem:[#allocation1 + $0x18] sm:$0xff pattern:$0x73625140] }
  0xca   :  { %2665 = vmatpush.bf16.msra.mxu0 %v4163_v31 }
  0xcb   :  { %2691 = vmatpush.bf16.msra.mxu2 %v4179_v32 }
  0xcc   :  { %2678 = vmatpush.bf16.msra.mxu1 %v4171_v33  ;;  %v4202_v33 = vld [vmem:[%s5259_s2 + $0x720] sm:$0xff] }
  0xcd   :  { %2704 = vmatpush.bf16.msra.mxu3 %v4187_v34  ;;  %v2440_v2 = vpop.f32.mrf.mxu2  ;;  %v4218_v34 = vld [vmem:[%s5259_s2 + $0x7a0] sm:$0xff] }
  0xce   :  { %2666 = vmatpush.bf16.msra.mxu0 %v4162_v35  ;;  %v4193_v35 = vld [vmem:[%s5259_s2 + $0x6d8] sm:$0xff] }
  0xcf   :  { %2692 = vmatpush.bf16.msra.mxu2 %v4178_v36  ;;  %v2453_v7 = vpop.f32.mrf.mxu3  ;;  %v4209_v36 = vld [vmem:[%s5259_s2 + $0x758] sm:$0xff] }
  0xd0   :  { %2679 = vmatpush.bf16.msra.mxu1 %v4170_v39  ;;  %v4201_v39 = vld [vmem:[%s5259_s2 + $0x718] sm:$0xff] }
  0xd1   :  { %2705 = vmatpush.bf16.msra.mxu3 %v4186_v40  ;;  %v4217_v40 = vld [vmem:[%s5259_s2 + $0x798] sm:$0xff] }
  0xd2   :  { %2667 = vmatpush.bf16.msra.mxu0 %v4161_v43 }
  0xd3   :  { %2693 = vmatpush.bf16.msra.mxu2 %v4177_v44  ;;  %v4192_v44 = vld [vmem:[%s5259_s2 + $0x6d0] sm:$0xff] }
  0xd4   :  { %2680 = vmatpush.bf16.msra.mxu1 %v4169_v45  ;;  %v4208_v45 = vld [vmem:[%s5259_s2 + $0x750] sm:$0xff] }
  0xd5   :  { %2706 = vmatpush.bf16.msra.mxu3 %v4185_v46 }
  0xd6   :  { %2668 = vmatpush.bf16.msra.mxu0 %v4160_v49  ;;  %v4191_v49 = vld [vmem:[%s5259_s2 + $0x6c8] sm:$0xff] }
  0xd7   :  { %2694 = vmatpush.bf16.msra.mxu2 %v4176_v50  ;;  %v4207_v50 = vld [vmem:[%s5259_s2 + $0x748] sm:$0xff] }
  0xd8   :  { %2681 = vmatpush.bf16.msra.mxu1 %v4168_v54 }
  0xd9   :  { %2707 = vmatpush.bf16.msra.mxu3 %v4184_v55  ;;  %v4190_v55 = vld [vmem:[%s5259_s2 + $0x6c0] sm:$0xff] }
  0xda   :  { %2669 = vmatpush.bf16.msra.mxu0 %v4159_v62  ;;  %v169_v62 = vld.sshfl [vmem:[#allocation1 + $0x20] sm:$0xff pattern:$0x73625140] }
  0xdb   :  { %2695 = vmatpush.bf16.msra.mxu2 %v4175_v63  ;;  %v171_v63 = vld.sshfl [vmem:[#allocation1 + $0x30] sm:$0xff pattern:$0x73625140]  ;;  %v233_v2 = vpack.c.bf16 %v169_v62, %v169_v62 }
  0xdc   :  { %2682 = vmatpush.bf16.msra.mxu1 %v4167_v0  ;;  %v232_v0 = vpack.c.bf16 %v168_v57, %v168_v57 }
  0xdd   :  { %2708 = vmatpush.bf16.msra.mxu3 %v4183_v1  ;;  %v234_v1 = vpack.c.bf16 %v170_v58, %v170_v58 }
  0xde   :  { %2670 = vmatpush.bf16.msra.mxu0 %v4158_v3  ;;  %v2464_v27 = vpop.f32.mrf.mxu0  ;;  %v235_v3 = vpack.c.bf16 %v171_v63, %v171_v63 }
  0xdf   :  { %2696 = vmatpush.bf16.msra.mxu2 %v4174_v4  ;;  %v2465_v28 = vadd.f32 %v2464_v27, %v5026_v53  ;;  %v4215_v53 = vld [vmem:[%s5259_s2 + $0x788] sm:$0xff]  ;;  %v4228_v4 = vld [vmem:[%s5259_s2 + $0x7f0] sm:$0xff] }
  0xe0   :  { %2683 = vmatpush.bf16.msra.mxu1 %v4166_v9  ;;  %v2477_v31 = vpop.f32.mrf.mxu1 }
  0xe1   :  { %2709 = vmatpush.bf16.msra.mxu3 %v4182_v10  ;;  %2671 = vmatmul.bf16.vlgmr.msra.gmra.mxu0 %v228_v13  ;;  %v2478_v32 = vadd.f32 %v2477_v31, %v2465_v28 }
  0xe2   :  { %2715 = vmatpush.bf16.msrb.mxu0 %v4197_v5  ;;  %2697 = vmatmul.bf16.vlgmr.msra.gmra.mxu2 %v230_v14  ;;  %v4227_v5 = vld [vmem:[%s5259_s2 + $0x7e8] sm:$0xff] }
  0xe3   :  { %2741 = vmatpush.bf16.msrb.mxu2 %v4213_v8  ;;  %2684 = vmatmul.bf16.vlgmr.msra.gmra.mxu1 %v229_v17  ;;  %v4226_v8 = vld [vmem:[%s5259_s2 + $0x7e0] sm:$0xff]  ;;  %v4224_v17 = vld [vmem:[%s5259_s2 + $0x7d0] sm:$0xff] }
  0xe4   :  { %2728 = vmatpush.bf16.msrb.mxu1 %v4205_v15  ;;  %2710 = vmatmul.bf16.vlgmr.msra.gmra.mxu3 %v231_v18 }
  0xe5   :  { %2754 = vmatpush.bf16.msrb.mxu3 %v4221_v16  ;;  %v2490_v37 = vpop.f32.mrf.mxu2 }
  0xe6   :  { %2716 = vmatpush.bf16.msrb.mxu0 %v4196_v19  ;;  %v2491_v38 = vadd.f32 %v2490_v37, %v2478_v32  ;;  %v2466_v42 = vpop.f32.mrf.mxu0  ;;  %v4223_v19 = vld [vmem:[%s5259_s2 + $0x7c8] sm:$0xff] }
  0xe7   :  { %2742 = vmatpush.bf16.msrb.mxu2 %v4212_v20  ;;  %v2503_v41 = vpop.f32.mrf.mxu3 }
  0xe8   :  { %2729 = vmatpush.bf16.msrb.mxu1 %v4204_v21  ;;  %v2504_v43 = vadd.f32 %v2503_v41, %v2491_v38  ;;  %v2479_v46 = vpop.f32.mrf.mxu1 }
  0xe9   :  { %2755 = vmatpush.bf16.msrb.mxu3 %v4220_v22  ;;  %v4222_v22 = vld [vmem:[%s5259_s2 + $0x7c0] sm:$0xff] }
  0xea   :  { %2717 = vmatpush.bf16.msrb.mxu0 %v4195_v23  ;;  %v172_v23 = vld.sshfl [vmem:[#allocation1 + $0x38] sm:$0xff pattern:$0x73625140] }
  0xeb   :  { %2743 = vmatpush.bf16.msrb.mxu2 %v4211_v24  ;;  %v236_v24 = vpack.c.bf16 %v172_v23, %v172_v23 }
  0xec   :  { %2730 = vmatpush.bf16.msrb.mxu1 %v4203_v25 }
  0xed   :  { %2756 = vmatpush.bf16.msrb.mxu3 %v4219_v26  ;;  %v2492_v51 = vpop.f32.mrf.mxu2 }
  0xee   :  { %2718 = vmatpush.bf16.msrb.mxu0 %v4194_v29 }
  0xef   :  { %2744 = vmatpush.bf16.msrb.mxu2 %v4210_v30  ;;  %v2505_v54 = vpop.f32.mrf.mxu3 }
  0xf0   :  { %2731 = vmatpush.bf16.msrb.mxu1 %v4202_v33 }
  0xf1   :  { %2757 = vmatpush.bf16.msrb.mxu3 %v4218_v34 }
  0xf2   :  { %2719 = vmatpush.bf16.msrb.mxu0 %v4193_v35 }
  0xf3   :  { %2745 = vmatpush.bf16.msrb.mxu2 %v4209_v36 }
  0xf4   :  { %2732 = vmatpush.bf16.msrb.mxu1 %v4201_v39 }
  0xf5   :  { %2758 = vmatpush.bf16.msrb.mxu3 %v4217_v40 }
  0xf6   :  { %2720 = vmatpush.bf16.msrb.mxu0 %v4192_v44 }
  0xf7   :  { %2746 = vmatpush.bf16.msrb.mxu2 %v4208_v45 }
  0xf8   :  { %2733 = vmatpush.bf16.msrb.mxu1 %v4200_v47 }
  0xf9   :  { %2759 = vmatpush.bf16.msrb.mxu3 %v4216_v48 }
  0xfa   :  { %2721 = vmatpush.bf16.msrb.mxu0 %v4191_v49 }
  0xfb   :  { %2747 = vmatpush.bf16.msrb.mxu2 %v4207_v50 }
  0xfc   :  { %2734 = vmatpush.bf16.msrb.mxu1 %v4199_v52 }
  0xfd   :  { %2760 = vmatpush.bf16.msrb.mxu3 %v4215_v53 }
  0xfe   :  { %2722 = vmatpush.bf16.msrb.mxu0 %v4190_v55  ;;  %v2516_v6 = vpop.f32.mrf.mxu0 }
  0xff   :  { %2748 = vmatpush.bf16.msrb.mxu2 %v4206_v56  ;;  %v2517_v7 = vadd.f32 %v2516_v6, %v2504_v43  ;;  %v4243_v56 = vmov 0.0  }
 0x100   :  { %2735 = vmatpush.bf16.msrb.mxu1 %v4198_v60  ;;  %v2529_v9 = vpop.f32.mrf.mxu1  ;;  %36 = vst [vmem:[#allocation3] sm:$0x1] %v4243_v56 }
 0x101   :  { %2761 = vmatpush.bf16.msrb.mxu3 %v4214_v61  ;;  %2723 = vmatmul.bf16.vlgmr.msrb.gmra.mxu0 %v232_v0  ;;  %v2530_v10 = vadd.f32 %v2529_v9, %v2517_v7  ;;  %37 = vst [vmem:[#allocation4] sm:$0x1] %v4243_v56 }
 0x102   :  { %2767 = vmatpush.bf16.msra.mxu0 %v4229_v59  ;;  %2749 = vmatmul.bf16.vlgmr.msrb.gmra.mxu2 %v234_v1 }
 0x103   :  { %2736 = vmatmul.bf16.vlgmr.msrb.gmra.mxu1 %v233_v2 }
 0x104   :  { %2762 = vmatmul.bf16.vlgmr.msrb.gmra.mxu3 %v235_v3 }
 0x105   :  { %v2542_v12 = vpop.f32.mrf.mxu2 }
 0x106   :  { %2768 = vmatpush.bf16.msra.mxu0 %v4228_v4  ;;  %v2543_v13 = vadd.f32 %v2542_v12, %v2530_v10  ;;  %v2518_v15 = vpop.f32.mrf.mxu0  ;;  %v4239_v12 = vld [vmem:[%s5262_s4] ss:$0 sm:$0xff] }
 0x107   :  { %v2555_v14 = vpop.f32.mrf.mxu3 }
 0x108   :  { %v2556_v16 = vadd.f32 %v2555_v14, %v2543_v13  ;;  %v2531_v18 = vpop.f32.mrf.mxu1 }
 0x10a   :  { %2769 = vmatpush.bf16.msra.mxu0 %v4227_v5 }
 0x10d   :  { %v2544_v20 = vpop.f32.mrf.mxu2 }
 0x10e   :  { %2770 = vmatpush.bf16.msra.mxu0 %v4226_v8  ;;  %v2814_v8 = vlaneseq  ;;  %v2886_v20 = vld [vmem:[%s5264_s7 + $0x70] sm:$0xff] }
 0x10f   :  { %v2557_v21 = vpop.f32.mrf.mxu3 }
 0x110   :  { %v2815_v10 = vshrl.u32 %v2814_v8, 7 }
 0x112   :  { %2771 = vmatpush.bf16.msra.mxu0 %v4225_v11  ;;  %vm2818_vm0 = vcmp.lt.s32.totalorder %v2815_v10, 2 }
 0x116   :  { %2772 = vmatpush.bf16.msra.mxu0 %v4224_v17 }
 0x11a   :  { %2773 = vmatpush.bf16.msra.mxu0 %v4223_v19 }
 0x11e   :  { %2774 = vmatpush.bf16.msra.mxu0 %v4222_v22  ;;  %v2568_v25 = vpop.f32.mrf.mxu0 }
 0x11f   :  { %v2569_v26 = vadd.f32 %v2568_v25, %v2556_v16  ;;  %v2887_v16 = vld [vmem:[%s5264_s7 + $0x78] sm:$0xff] }
 0x120   :  { %v2581_v27 = vpop.f32.mrf.mxu1  ;;  %2892 = vmatpush.msra.mxu1 %v2887_v16 }
 0x121   :  { %2775 = vmatmul.bf16.vlgmr.msra.gmra.mxu0 %v236_v24  ;;  %v2582_v28 = vadd.f32 %v2581_v27, %v2569_v26  ;;  %v2885_v24 = vld [vmem:[%s5264_s7 + $0x68] sm:$0xff]  ;;  %v2884_v27 = vld [vmem:[%s5264_s7 + $0x60] sm:$0xff] }
 0x122   :  { %2893 = vmatpush.msra.mxu1 %v2886_v20 }
 0x124   :  { %2894 = vmatpush.msra.mxu1 %v2885_v24 }
 0x125   :  { %v2594_v29 = vpop.f32.mrf.mxu2 }
 0x126   :  { %v2595_v30 = vadd.f32 %v2594_v29, %v2582_v28  ;;  %v2570_v32 = vpop.f32.mrf.mxu0  ;;  %2895 = vmatpush.msra.mxu1 %v2884_v27 }
 0x127   :  { %v2607_v31 = vpop.f32.mrf.mxu3 }
 0x128   :  { %v2608_v33 = vadd.f32 %v2607_v31, %v2595_v30  ;;  %v2583_v34 = vpop.f32.mrf.mxu1  ;;  %v2883_v30 = vld [vmem:[%s5264_s7 + $0x58] sm:$0xff] }
 0x129   :  { %2896 = vmatpush.msra.mxu1 %v2883_v30  ;;  %v2820_v34 = vld [vmem:[#allocation3] sm:$0x1] }
 0x12d   :  { %v2596_v35 = vpop.f32.mrf.mxu2 }
 0x12f   :  { %v2609_v36 = vpop.f32.mrf.mxu3 }
 0x13e   :  { %v2620_v37 = vpop.f32.mrf.mxu0 }
 0x13f   :  { %v2621_v38 = vadd.f32 %v2620_v37, %v2608_v33  ;;  %v2882_v33 = vld [vmem:[%s5264_s7 + $0x50] sm:$0xff]  ;;  %v2881_v37 = vld [vmem:[%s5264_s7 + $0x48] sm:$0xff] }
 0x140   :  { %v2633_v39 = vpop.f32.mrf.mxu1  ;;  %2897 = vmatpush.msra.mxu1 %v2882_v33 }
 0x141   :  { %v2634_v40 = vadd.f32 %v2633_v39, %v2621_v38  ;;  %v2829_v38 = vld [vmem:[#allocation4] sm:$0x1] }
 0x142   :  { %2898 = vmatpush.msra.mxu1 %v2881_v37 }
 0x145   :  { %v2646_v41 = vpop.f32.mrf.mxu2 }
 0x146   :  { %v2647_v42 = vadd.f32 %v2646_v41, %v2634_v40  ;;  %v2622_v44 = vpop.f32.mrf.mxu0  ;;  %v2880_v41 = vld [vmem:[%s5264_s7 + $0x40] sm:$0xff] }
 0x147   :  { %v2659_v43 = vpop.f32.mrf.mxu3  ;;  %2899 = vmatpush.msra.mxu1 %v2880_v41  ;;  %v2878_v44 = vld [vmem:[%s5264_s7 + $0x30] sm:$0xff] }
 0x148   :  { %v2660_v45 = vadd.f32 %v2659_v43, %v2647_v42  ;;  %v2635_v46 = vpop.f32.mrf.mxu1  ;;  %v2879_v43 = vld [vmem:[%s5264_s7 + $0x38] sm:$0xff] }
 0x149   :  { %2900 = vmatpush.msra.mxu1 %v2879_v43  ;;  %v2876_v46 = vld [vmem:[%s5264_s7 + $0x20] sm:$0xff] }
 0x14b   :  { %2901 = vmatpush.msra.mxu1 %v2878_v44 }
 0x14d   :  { %v2648_v47 = vpop.f32.mrf.mxu2 }
 0x14f   :  { %v2661_v48 = vpop.f32.mrf.mxu3 }
 0x15e   :  { %v2672_v49 = vpop.f32.mrf.mxu0 }
 0x15f   :  { %v2673_v61 = vadd.f32 %v2672_v49, %v2660_v45  ;;  %v2877_v45 = vld [vmem:[%s5264_s7 + $0x28] sm:$0xff]  ;;  %v2875_v49 = vld [vmem:[%s5264_s7 + $0x18] sm:$0xff] }
 0x160   :  { %v2685_v50 = vpop.f32.mrf.mxu1  ;;  %2902 = vmatpush.msra.mxu1 %v2877_v45 }
 0x161   :  { %v2686_v1 = vadd.f32 %v2685_v50, %v2673_v61 }
 0x162   :  { %2903 = vmatpush.msra.mxu1 %v2876_v46 }
 0x164   :  { %2904 = vmatpush.msra.mxu1 %v2875_v49 }
 0x165   :  { %v2698_v51 = vpop.f32.mrf.mxu2 }
 0x166   :  { %v2674_v53 = vpop.f32.mrf.mxu0  ;;  %v2699_v2 = vadd.f32 %v2698_v51, %v2686_v1 }
 0x167   :  { %v2711_v52 = vpop.f32.mrf.mxu3  ;;  %v2874_v53 = vld [vmem:[%s5264_s7 + $0x10] sm:$0xff] }
 0x168   :  { %v2687_v54 = vpop.f32.mrf.mxu1  ;;  %v2712_v5 = vadd.f32 %v2711_v52, %v2699_v2  ;;  %2905 = vmatpush.msra.mxu1 %v2874_v53 }
 0x16d   :  { %v2700_v55 = vpop.f32.mrf.mxu2 }
 0x16e   :  { %v2873_v55 = vld [vmem:[%s5264_s7 + $0x8] sm:$0xff] }
 0x16f   :  { %v2713_v57 = vpop.f32.mrf.mxu3  ;;  %2906 = vmatpush.msra.mxu1 %v2873_v55 }
 0x170   :  { %v2872_v57 = vld [vmem:[%s5264_s7] sm:$0xff] }
 0x171   :  { %2907 = vmatpush.msra.mxu1 %v2872_v57 }
 0x17e   :  { %v2724_v58 = vpop.f32.mrf.mxu0 }
 0x17f   :  { %v2725_v6 = vadd.f32 %v2724_v58, %v2712_v5 }
 0x180   :  { %v2737_v59 = vpop.f32.mrf.mxu1 }
 0x181   :  { %v2738_v7 = vadd.f32 %v2737_v59, %v2725_v6 }
 0x185   :  { %v2750_v60 = vpop.f32.mrf.mxu2 }
 0x186   :  { %v2726_v63 = vpop.f32.mrf.mxu0  ;;  %v2751_v9 = vadd.f32 %v2750_v60, %v2738_v7 }
 0x187   :  { %v2763_v62 = vpop.f32.mrf.mxu3 }
 0x188   :  { %v2739_v0 = vpop.f32.mrf.mxu1  ;;  %v2764_v11 = vadd.f32 %v2763_v62, %v2751_v9 }
 0x189   :  { %v2846_v0 = vld [vmem:[%s5265_s5] sm:$0x1] }
 0x18d   :  { %v2752_v3 = vpop.f32.mrf.mxu2 }
 0x18f   :  { %v2765_v4 = vpop.f32.mrf.mxu3 }
 0x190   :  { %v2859_v4 = vld [vmem:[%s5266_s6] sm:$0x1] }
 0x19e   :  { %v2776_v13 = vpop.f32.mrf.mxu0 }
 0x19f   :  { %v2777_v14 = vadd.f32 %v2776_v13, %v2764_v11 }
 0x1a1   :  { %v5194_v15 = vadd.f32 %v4239_v12, %v2777_v14  ;;  %v4240_v12 = vld [vmem:[%s5263_s8] ss:$0 sm:$0xff] }
 0x1a3   :  { %v2819_v17 = vsel %vm2818_vm0, %v5194_v15, 0.0 }
 0x1a4   :  { %v2821_v18 = vrot.slane %v2819_v17, 4  ;;  %v2830_v19 = vmul.f32 %v2819_v17, %v2819_v17 }
 0x1a6   :  { %v2822_v21 = vadd.f32 %v2821_v18, %v2819_v17  ;;  %v2831_v22 = vrot.slane %v2830_v19, 4  ;;  %v2778_v23 = vpop.f32.mrf.mxu0 }
 0x1a8   :  { %v2823_v25 = vrot.slane %v2822_v21, 2  ;;  %v2832_v26 = vadd.f32 %v2831_v22, %v2830_v19 }
 0x1aa   :  { %v2824_v28 = vadd.f32 %v2823_v25, %v2822_v21  ;;  %v2833_v29 = vrot.slane %v2832_v26, 2 }
 0x1ac   :  { %v2825_v31 = vrot.slane %v2824_v28, 1  ;;  %v2834_v32 = vadd.f32 %v2833_v29, %v2832_v26 }
 0x1ae   :  { %v2826_v35 = vadd.f32 %v2825_v31, %v2824_v28  ;;  %v2835_v36 = vrot.slane %v2834_v32, 1 }
 0x1b0   :  { %v2827_v39 = vadd.f32 %v2826_v35, %v2820_v34  ;;  %v2836_v40 = vadd.f32 %v2835_v36, %v2834_v32 }
 0x1b2   :  { %2828 = vst [vmem:[#allocation3] sm:$0x1] %v2827_v39  ;;  %v2837_v42 = vadd.f32 %v2836_v40, %v2829_v38 }
 0x1b4   :  { %2838 = vst [vmem:[#allocation4] sm:$0x1] %v2837_v42 }
 0x1b9   :  { %v2839_v47 = vld [vmem:[#allocation3] sm:$0x1] }
 0x1ba   :  { %v2840_v48 = vmul.f32 0.5, %v2839_v47 }
 0x1bb   :  { %v2841_v50 = vld [vmem:[#allocation4] sm:$0x1] }
 0x1bc   :  { %v2842_v51 = vmul.f32 0.5, %v2841_v50  ;;  %v2843_v52 = vmul.f32 %v2840_v48, %v2840_v48 }
 0x1be   :  { %v2844_v54 = vsub.f32 %v2842_v51, %v2843_v52 }
 0x1c0   :  { %v2845_v56 = vmax.f32 %v2844_v54, 0.0 }
 0x1c2   :  { %v2847_v58 = vadd.f32 1e-05, %v2845_v56 }
 0x1c4   :  { %4241 = vrsqrt.f32 %v2847_v58  ;;  %vm2854_vm2 = vweird.f32 %v2847_v58 }
 0x1ca   :  { %v4242_v59 = vpop.eup %4241 }
 0x1cb   :  { %v2849_v60 = vmul.f32 %v4242_v59, %v2847_v58  ;;  %vm2855_vm1 = vweird.f32 %v4242_v59 }
 0x1cc   :  { %vm2856_vm3 = vmor %vm2854_vm2, %vm2855_vm1 }
 0x1cd   :  { %v2850_v61 = vmul.f32 %v4242_v59, %v2849_v60 }
 0x1cf   :  { %v2851_v62 = vmul.f32 0.5, %v2850_v61 }
 0x1d1   :  { %v2852_v63 = vsub.f32 1.5, %v2851_v62 }
 0x1d3   :  { %v2853_v1 = vmul.f32 %v4242_v59, %v2852_v63 }
 0x1d5   :  { %v2857_v2 = vsel %vm2856_vm3, %v4242_v59, %v2853_v1 }
 0x1d6   :  { %v2858_v3 = vmul.f32 %v2857_v2, %v2846_v0 }
 0x1d8   :  { %v2860_v5 = vmul.f32 %v2858_v3, %v2840_v48  ;;  %v2864_v6 = vperm.slane %v2858_v3, 0 }
 0x1da   :  { %v2861_v7 = vsub.f32 %v2859_v4, %v2860_v5  ;;  %v2866_v8 = vmul.f32 %v2864_v6, %v5194_v15 }
 0x1dc   :  { %v2868_v9 = vperm.slane %v2861_v7, 0 }
 0x1de   :  { %v2870_v10 = vadd.f32 %v2868_v9, %v2866_v8 }
 0x1e0   :  { %v2871_v11 = vmax.f32 %v2870_v10, 0.0 }
 0x1e2   :  { %2908 = vmatmul.f32.vlgmr.msra.gmra.mxu1 %v2871_v11 }
 0x25f   :  { %v2909_v13 = vpop.f32.mrf.mxu1 }
 0x260   :  { %v2910_v14 = vadd.f32 %v4240_v12, %v2909_v13 }
 0x262   :  { %2913 = vst.msk [vmem:[%s5267_s9] sm:$0xff] %vm2912_vm4, %v2910_v14 }

</bundles_post_ra>
